<compile_context>
chip_gen: v5e
topology: v5e:2x2
jax: 0.10.0
libtpu: 0.0.40
codegen_flags: <defaults>
</compile_context>

<pallas_src>
import functools
import math

import jax
import jax.numpy as jnp
import numpy as np
from jax.experimental import pallas as pl
from jax.experimental.pallas import tpu as pltpu

NEG_INF = -1e30           # finite stand-in for -inf (identical after softmax, avoids inf-inf NaNs)
RMS_EPS = 1.1920929e-7    # torch.finfo(float32).eps -- F.rms_norm default eps
_MIB = 1024 * 1024


def _maybe_vmem_limit(nbytes):
    # Raise the scoped-VMEM limit above the ~32 MiB default only when the estimated working
    # set needs it; cap at 64 MiB so the request also fits v7x's 64 MiB/core VMEM
    # (v5e/v6e have 128 MiB and could go higher).
    if nbytes <= 32 * _MIB:
        return None
    return int(min(64 * _MIB, nbytes + 8 * _MIB))


# --------------------------------------------------------------------------------------
# Kernel 1: grouped QKV projection + per-head RMSNorm + rotary embedding
# --------------------------------------------------------------------------------------
def qkv_rope_kernel(x_ref, wq_ref, wk_ref, wv_ref, cos_ref, sin_ref,
                    q_out_ref, k_out_ref, v_out_ref, *, heads_per_group, hd, inv_sqrt_hd):
    hd2 = hd // 2
    x = x_ref[0]                                                         # (ts, C) bf16 (pre-cast)

    # one wide MXU matmul per projection for the whole head group, f32 accumulation
    q_all = jnp.dot(x, wq_ref[...], preferred_element_type=jnp.float32)  # (ts, g*hd)
    k_all = jnp.dot(x, wk_ref[...], preferred_element_type=jnp.float32)
    v_all = jnp.dot(x, wv_ref[...], preferred_element_type=jnp.float32)

    cos = cos_ref[...]                                                   # (ts, hd/2) f32 (bf16-rounded)
    sin = sin_ref[...]

    def rope(u):                                                         # (ts, hd) f32
        u1 = u[:, :hd2]
        u2 = u[:, hd2:]
        # TODO(synk): switch to pltpu.roll + [cos,cos]/[sin,-sin] full-width tables (XLU shuffle)
        #             once hd >= 128 so the half-slices are lane-aligned.
        return jnp.concatenate([u1 * cos + u2 * sin, u2 * cos - u1 * sin], axis=-1)

    for h in range(heads_per_group):                                     # static unroll
        q = q_all[:, h * hd:(h + 1) * hd]
        k = k_all[:, h * hd:(h + 1) * hd]
        v = v_all[:, h * hd:(h + 1) * hd]
        # per-head RMSNorm in f32; fold the SDPA 1/sqrt(hd) scale into q (free multiply)
        qn = q * (jax.lax.rsqrt(jnp.mean(q * q, axis=-1, keepdims=True) + RMS_EPS) * inv_sqrt_hd)
        kn = k * jax.lax.rsqrt(jnp.mean(k * k, axis=-1, keepdims=True) + RMS_EPS)
        q_out_ref[0, h] = rope(qn).astype(q_out_ref.dtype)
        k_out_ref[0, h] = rope(kn).astype(k_out_ref.dtype)
        v_out_ref[0, h] = v.astype(v_out_ref.dtype)


# --------------------------------------------------------------------------------------
# Kernel 2: flash-style causal attention (online softmax over k tiles) + output projection
# --------------------------------------------------------------------------------------
def flash_attn_proj_kernel(q_ref, k_ref, v_ref, wp_ref, out_ref,
                           m_ref, l_ref, acc_ref, *, n_head, hd, tq, tk):
    i = pl.program_id(1)            # query tile
    j = pl.program_id(2)            # key tile (reduction axis, last in grid)

    @pl.when(j == 0)
    def _init():
        m_ref[...] = jnp.full(m_ref.shape, NEG_INF, jnp.float32)
        l_ref[...] = jnp.zeros(l_ref.shape, jnp.float32)
        acc_ref[...] = jnp.zeros(acc_ref.shape, jnp.float32)

    def scores():
        return jnp.einsum('hqd,hkd->hqk', q_ref[0], k_ref[0],
                          preferred_element_type=jnp.float32)            # (H, tq, tk) f32

    def online_softmax_update(s):
        m_prev = m_ref[...]                                              # (H, tq, 1)
        m_new = jnp.maximum(m_prev, jnp.max(s, axis=-1, keepdims=True))
        alpha = jnp.exp(m_prev - m_new)
        p = jnp.exp(s - m_new)                                           # f32 softmax math
        l_ref[...] = alpha * l_ref[...] + jnp.sum(p, axis=-1, keepdims=True)
        acc_ref[...] = alpha * acc_ref[...] + jnp.einsum(
            'hqk,hkd->hqd', p.astype(jnp.bfloat16), v_ref[0],
            preferred_element_type=jnp.float32)                          # (H, tq, hd)
        m_ref[...] = m_new

    # Strictly-lower blocks (j < i): fully unmasked -> no iota/compare/select work.
    @pl.when(j < i)
    def _off_diagonal():
        online_softmax_update(scores())

    # Diagonal block (j == i): apply the causal mask (tq == tk, so global offsets cancel).
    @pl.when(j == i)
    def _diagonal():
        s = scores()
        row = jax.lax.broadcasted_iota(jnp.int32, (tq, tk), 0)
        col = jax.lax.broadcasted_iota(jnp.int32, (tq, tk), 1)
        online_softmax_update(jnp.where((col <= row)[None, :, :], s, NEG_INF))

    # Last k step: normalize and fuse the output projection into a single (tq, C) f32 tile.
    @pl.when(j == pl.num_programs(2) - 1)
    def _finalize():
        y = (acc_ref[...] * pl.reciprocal(l_ref[...], approx=True)).astype(jnp.bfloat16)
        o = jnp.zeros((tq, wp_ref.shape[1]), jnp.float32)
        for h in range(n_head):                                          # static unroll
            o = o + jnp.dot(y[h], wp_ref[h * hd:(h + 1) * hd, :],
                            preferred_element_type=jnp.float32)
        out_ref[0] = o.astype(out_ref.dtype)                             # lane-dense (tq, C) store


# --------------------------------------------------------------------------------------
# Wrapper
# --------------------------------------------------------------------------------------
def causal_self_attention(x, wq, wk, wv, wproj, *, n_head,
                          seq_tile=None, q_tile=None, heads_per_group=None):
    B, S, C = x.shape
    H = n_head
    assert C % H == 0
    hd = C // H
    hd2 = hd // 2
    assert hd % 2 == 0

    ts = seq_tile if seq_tile is not None else min(S, 256)
    tq = q_tile if q_tile is not None else min(S, 256)   # NOTE: prefer 128 on v5e (128-wide MXU)
    tk = tq                                              # causal block-skip logic assumes tq == tk
    assert S % ts == 0 and S % tq == 0

    if heads_per_group is None:
        heads_per_group = min(H, max(1, 256 // hd))      # aim for matmul N = g*hd >= 256
    while H % heads_per_group:
        heads_per_group -= 1
    hg = heads_per_group

    # bf16 MXU operands; weights transposed once to (C_in, C_out) with head-major output cols
    x_bf = x.astype(jnp.bfloat16)
    wq_t = wq.T.astype(jnp.bfloat16)       # (C, C)
    wk_t = wk.T.astype(jnp.bfloat16)
    wv_t = wv.T.astype(jnp.bfloat16)
    wp_t = wproj.T.astype(jnp.bfloat16)    # (C, C): rows ordered head-major (h*hd + d)

    # rotary tables, bf16-rounded exactly like the PyTorch cache, used in f32
    inv_freq = 1.0 / (10000.0 ** (jnp.arange(0, hd, 2, dtype=jnp.float32) / hd))
    freqs = jnp.outer(jnp.arange(S, dtype=jnp.float32), inv_freq)        # (S, hd/2)
    cos = jnp.cos(freqs).astype(jnp.bfloat16).astype(jnp.float32)
    sin = jnp.sin(freqs).astype(jnp.bfloat16).astype(jnp.float32)

    # ---------------- kernel 1: QKV projection + RMSNorm + RoPE ----------------
    k1_bytes = (2 * ts * C * 2 + 3 * 2 * C * hg * hd * 2 + 2 * 2 * ts * hd2 * 4
                + 3 * 2 * hg * ts * hd * 2)
    qkv_shape = jax.ShapeDtypeStruct((B, H, S, hd), jnp.bfloat16)
    kernel1 = functools.partial(qkv_rope_kernel, heads_per_group=hg, hd=hd,
                                inv_sqrt_hd=1.0 / math.sqrt(hd))
    q_rot, k_rot, v = pl.pallas_call(
        kernel1,
        out_shape=(qkv_shape, qkv_shape, qkv_shape),
        grid=(H // hg, B, S // ts),
        in_specs=[
            pl.BlockSpec((1, ts, C), lambda g, b, i: (b, i, 0)),         # x tile
            pl.BlockSpec((C, hg * hd), lambda g, b, i: (0, g)),          # Wq slab (resident per group)
            pl.BlockSpec((C, hg * hd), lambda g, b, i: (0, g)),          # Wk slab
            pl.BlockSpec((C, hg * hd), lambda g, b, i: (0, g)),          # Wv slab
            pl.BlockSpec((ts, hd2), lambda g, b, i: (i, 0)),             # cos tile
            pl.BlockSpec((ts, hd2), lambda g, b, i: (i, 0)),             # sin tile
        ],
        out_specs=(
            pl.BlockSpec((1, hg, ts, hd), lambda g, b, i: (b, g, i, 0)),
            pl.BlockSpec((1, hg, ts, hd), lambda g, b, i: (b, g, i, 0)),
            pl.BlockSpec((1, hg, ts, hd), lambda g, b, i: (b, g, i, 0)),
        ),
        compiler_params=pltpu.CompilerParams(
            dimension_semantics=("parallel", "parallel", "parallel"),
            vmem_limit_bytes=_maybe_vmem_limit(k1_bytes)),
    )(x_bf, wq_t, wk_t, wv_t, cos, sin)

    # ---------------- kernel 2: causal flash attention + output projection ----------------
    k2_bytes = (2 * H * tq * hd * 2 + 2 * 2 * H * tk * hd * 2 + C * C * 2
                + 2 * tq * C * x.dtype.itemsize
                + (2 * H * tq + H * tq * hd) * 4 + H * tq * tk * 4)
    kernel2 = functools.partial(flash_attn_proj_kernel, n_head=H, hd=hd, tq=tq, tk=tk)
    out = pl.pallas_call(
        kernel2,
        out_shape=jax.ShapeDtypeStruct((B, S, C), x.dtype),
        grid=(B, S // tq, S // tk),
        in_specs=[
            pl.BlockSpec((1, H, tq, hd), lambda b, i, j: (b, 0, i, 0)),  # q (resident across j)
            # clamp: skipped upper-triangular blocks (j > i) repeat block i -> no HBM re-fetch
            pl.BlockSpec((1, H, tk, hd), lambda b, i, j: (b, 0, jnp.minimum(i, j), 0)),  # k
            pl.BlockSpec((1, H, tk, hd), lambda b, i, j: (b, 0, jnp.minimum(i, j), 0)),  # v
            pl.BlockSpec(memory_space=pltpu.MemorySpace.VMEM),           # Wproj: whole, single-buffered
        ],
        out_specs=pl.BlockSpec((1, tq, C), lambda b, i, j: (b, i, 0)),
        scratch_shapes=[
            pltpu.VMEM((H, tq, 1), jnp.float32),    # running max m
            pltpu.VMEM((H, tq, 1), jnp.float32),    # running sum l
            pltpu.VMEM((H, tq, hd), jnp.float32),   # output accumulator
        ],
        compiler_params=pltpu.CompilerParams(
            dimension_semantics=("parallel", "parallel", "arbitrary"),
            vmem_limit_bytes=_maybe_vmem_limit(k2_bytes)),
    )(q_rot, k_rot, v, wp_t)
    return out


# --------------------------------------------------------------------------------------
# Pure-JAX reference (replicates the PyTorch forward in f32) for correctness checking
# --------------------------------------------------------------------------------------
def reference_forward(x, wq, wk, wv, wp, *, n_head):
    B, T, C = x.shape
    hd = C // n_head
    q = (x @ wq.T).reshape(B, T, n_head, hd)
    k = (x @ wk.T).reshape(B, T, n_head, hd)
    v = (x @ wv.T).reshape(B, T, n_head, hd)

    inv_freq = 1.0 / (10000.0 ** (jnp.arange(0, hd, 2, dtype=jnp.float32) / hd))
    freqs = jnp.outer(jnp.arange(T, dtype=jnp.float32), inv_freq)
    cos = jnp.cos(freqs).astype(jnp.bfloat16).astype(jnp.float32)[None, :, None, :]
    sin = jnp.sin(freqs).astype(jnp.bfloat16).astype(jnp.float32)[None, :, None, :]

    rms = lambda u: u * jax.lax.rsqrt(jnp.mean(u * u, axis=-1, keepdims=True) + RMS_EPS)
    q, k = rms(q), rms(k)

    def rope(u):
        d = hd // 2
        u1, u2 = u[..., :d], u[..., d:]
        return jnp.concatenate([u1 * cos + u2 * sin, u2 * cos - u1 * sin], axis=-1)

    q, k = rope(q), rope(k)
    qh, kh, vh = (t.transpose(0, 2, 1, 3) for t in (q, k, v))
    s = jnp.einsum('bhqd,bhkd->bhqk', qh, kh) / math.sqrt(hd)
    mask = jnp.tril(jnp.ones((T, T), dtype=bool))
    s = jnp.where(mask, s, -jnp.inf)
    p = jax.nn.softmax(s, axis=-1)
    y = jnp.einsum('bhqk,bhkd->bhqd', p, vh)
    y = y.transpose(0, 2, 1, 3).reshape(B, T, C)
    return y @ wp.T


if __name__ == "__main__":
    # Small config consistent with the module: n_embd=64, n_head=4 (head_dim=16), B=2, T=32
    B, T, C, H = 2, 32, 64, 4

    key = jax.random.PRNGKey(0)
    kx, kq, kk, kv, kp = jax.random.split(key, 5)
    wscale = 1.0 / math.sqrt(C)
    wq = jax.random.normal(kq, (C, C), jnp.float32) * wscale
    wk = jax.random.normal(kk, (C, C), jnp.float32) * wscale
    wv = jax.random.normal(kv, (C, C), jnp.float32) * wscale
    # NOTE: PyTorch zero-inits c_proj; a random weight is used here so the check is meaningful.
    wp = jax.random.normal(kp, (C, C), jnp.float32) * wscale
    x = jax.random.normal(kx, (B, T, C), jnp.float32)

    out = causal_self_attention(x, wq, wk, wv, wp, n_head=H)
    out = jax.block_until_ready(out)

    ref = reference_forward(x, wq, wk, wv, wp, n_head=H)
    assert out.shape == (B, T, C)
    # tolerance reflects bf16 MXU inputs (f32 accumulation); reference is pure f32
    np.testing.assert_allclose(np.asarray(out), np.asarray(ref), rtol=3e-2, atol=3e-2)
    print("KERNEL_OK")
</pallas_src>

<mosaic_0001>
module attributes {stable_mosaic.version = 11 : i64} {
  func.func @qkv_rope_kernel(%arg0: i32, %arg1: i32, %arg2: i32, %arg3: memref<1x32x64xbf16, #tpu.memory_space<vmem>>, %arg4: memref<64x64xbf16, #tpu.memory_space<vmem>>, %arg5: memref<64x64xbf16, #tpu.memory_space<vmem>>, %arg6: memref<64x64xbf16, #tpu.memory_space<vmem>>, %arg7: memref<32x8xf32, #tpu.memory_space<vmem>>, %arg8: memref<32x8xf32, #tpu.memory_space<vmem>>, %arg9: memref<1x4x32x16xbf16, #tpu.memory_space<vmem>>, %arg10: memref<1x4x32x16xbf16, #tpu.memory_space<vmem>>, %arg11: memref<1x4x32x16xbf16, #tpu.memory_space<vmem>>) attributes {dimension_semantics = [#tpu.dimension_semantics<parallel>, #tpu.dimension_semantics<parallel>, #tpu.dimension_semantics<parallel>], iteration_bounds = array<i64: 1, 2, 1>, scalar_prefetch = 0 : i64, scratch_operands = 0 : i64, tpu.core_type = #tpu.core_type<tc>, window_params = [{transform_indices = @transform_0, window_bounds = array<i64: 1, 32, 64>}, {transform_indices = @transform_1, window_bounds = array<i64: 64, 64>}, {transform_indices = @transform_2, window_bounds = array<i64: 64, 64>}, {transform_indices = @transform_3, window_bounds = array<i64: 64, 64>}, {transform_indices = @transform_4, window_bounds = array<i64: 32, 8>}, {transform_indices = @transform_5, window_bounds = array<i64: 32, 8>}, {transform_indices = @transform_6, window_bounds = array<i64: 1, 4, 32, 16>}, {transform_indices = @transform_7, window_bounds = array<i64: 1, 4, 32, 16>}, {transform_indices = @transform_8, window_bounds = array<i64: 1, 4, 32, 16>}]} {
    %c0 = arith.constant 0 : index
    %c0_0 = arith.constant 0 : index
    %c0_1 = arith.constant 0 : index
    %0 = vector.load %arg3[%c0, %c0_0, %c0_1] : memref<1x32x64xbf16, #tpu.memory_space<vmem>>, vector<1x32x64xbf16>
    %1 = vector.shape_cast %0 : vector<1x32x64xbf16> to vector<32x64xbf16>
    %c0_2 = arith.constant 0 : index
    %c0_3 = arith.constant 0 : index
    %2 = vector.load %arg4[%c0_2, %c0_3] : memref<64x64xbf16, #tpu.memory_space<vmem>>, vector<64x64xbf16>
    %cst = arith.constant dense<0.000000e+00> : vector<32x64xf32>
    %3 = tpu.matmul %1, %2, %cst {dimension_numbers = #tpu.dot_dimension_numbers<[1], [0], [0], [1], [0, 0, 1, 1], [], []>} : vector<32x64xbf16>, vector<64x64xbf16>, vector<32x64xf32> -> vector<32x64xf32>
    %c0_4 = arith.constant 0 : index
    %c0_5 = arith.constant 0 : index
    %4 = vector.load %arg5[%c0_4, %c0_5] : memref<64x64xbf16, #tpu.memory_space<vmem>>, vector<64x64xbf16>
    %cst_6 = arith.constant dense<0.000000e+00> : vector<32x64xf32>
    %5 = tpu.matmul %1, %4, %cst_6 {dimension_numbers = #tpu.dot_dimension_numbers<[1], [0], [0], [1], [0, 0, 1, 1], [], []>} : vector<32x64xbf16>, vector<64x64xbf16>, vector<32x64xf32> -> vector<32x64xf32>
    %c0_7 = arith.constant 0 : index
    %c0_8 = arith.constant 0 : index
    %6 = vector.load %arg6[%c0_7, %c0_8] : memref<64x64xbf16, #tpu.memory_space<vmem>>, vector<64x64xbf16>
    %cst_9 = arith.constant dense<0.000000e+00> : vector<32x64xf32>
    %7 = tpu.matmul %1, %6, %cst_9 {dimension_numbers = #tpu.dot_dimension_numbers<[1], [0], [0], [1], [0, 0, 1, 1], [], []>} : vector<32x64xbf16>, vector<64x64xbf16>, vector<32x64xf32> -> vector<32x64xf32>
    %c0_10 = arith.constant 0 : index
    %c0_11 = arith.constant 0 : index
    %8 = vector.load %arg7[%c0_10, %c0_11] : memref<32x8xf32, #tpu.memory_space<vmem>>, vector<32x8xf32>
    %c0_12 = arith.constant 0 : index
    %c0_13 = arith.constant 0 : index
    %9 = vector.load %arg8[%c0_12, %c0_13] : memref<32x8xf32, #tpu.memory_space<vmem>>, vector<32x8xf32>
    %10 = vector.extract_strided_slice %3 {offsets = [0, 0], sizes = [32, 16], strides = [1, 1]} : vector<32x64xf32> to vector<32x16xf32>
    %11 = vector.extract_strided_slice %5 {offsets = [0, 0], sizes = [32, 16], strides = [1, 1]} : vector<32x64xf32> to vector<32x16xf32>
    %12 = vector.extract_strided_slice %7 {offsets = [0, 0], sizes = [32, 16], strides = [1, 1]} : vector<32x64xf32> to vector<32x16xf32>
    %13 = arith.mulf %10, %10 : vector<32x16xf32>
    %cst_14 = arith.constant dense<0.000000e+00> : vector<32xf32>
    %14 = vector.multi_reduction <add>, %13, %cst_14 [1] : vector<32x16xf32> to vector<32xf32>
    %15 = vector.shape_cast %14 : vector<32xf32> to vector<32x1xf32>
    %cst_15 = arith.constant 1.600000e+01 : f32
    %16 = vector.broadcast %cst_15 : f32 to vector<32x1xf32>
    %17 = arith.divf %15, %16 : vector<32x1xf32>
    %cst_16 = arith.constant 1.1920929E-7 : f32
    %18 = vector.broadcast %cst_16 : f32 to vector<32x1xf32>
    %19 = arith.addf %17, %18 : vector<32x1xf32>
    %20 = math.rsqrt %19 : vector<32x1xf32>
    %cst_17 = arith.constant 2.500000e-01 : f32
    %21 = vector.broadcast %cst_17 : f32 to vector<32x1xf32>
    %22 = arith.mulf %20, %21 : vector<32x1xf32>
    %23 = vector.broadcast %22 : vector<32x1xf32> to vector<32x16xf32>
    %24 = arith.mulf %10, %23 : vector<32x16xf32>
    %25 = arith.mulf %11, %11 : vector<32x16xf32>
    %cst_18 = arith.constant dense<0.000000e+00> : vector<32xf32>
    %26 = vector.multi_reduction <add>, %25, %cst_18 [1] : vector<32x16xf32> to vector<32xf32>
    %27 = vector.shape_cast %26 : vector<32xf32> to vector<32x1xf32>
    %cst_19 = arith.constant 1.600000e+01 : f32
    %28 = vector.broadcast %cst_19 : f32 to vector<32x1xf32>
    %29 = arith.divf %27, %28 : vector<32x1xf32>
    %cst_20 = arith.constant 1.1920929E-7 : f32
    %30 = vector.broadcast %cst_20 : f32 to vector<32x1xf32>
    %31 = arith.addf %29, %30 : vector<32x1xf32>
    %32 = math.rsqrt %31 : vector<32x1xf32>
    %33 = vector.broadcast %32 : vector<32x1xf32> to vector<32x16xf32>
    %34 = arith.mulf %11, %33 : vector<32x16xf32>
    %35 = vector.extract_strided_slice %24 {offsets = [0, 0], sizes = [32, 8], strides = [1, 1]} : vector<32x16xf32> to vector<32x8xf32>
    %36 = vector.extract_strided_slice %24 {offsets = [0, 8], sizes = [32, 8], strides = [1, 1]} : vector<32x16xf32> to vector<32x8xf32>
    %37 = arith.mulf %35, %8 : vector<32x8xf32>
    %38 = arith.mulf %36, %9 : vector<32x8xf32>
    %39 = arith.addf %37, %38 : vector<32x8xf32>
    %40 = arith.mulf %36, %8 : vector<32x8xf32>
    %41 = arith.mulf %35, %9 : vector<32x8xf32>
    %42 = arith.subf %40, %41 : vector<32x8xf32>
    %43 = tpu.concatenate %39, %42 in 1 : vector<32x8xf32>, vector<32x8xf32> -> vector<32x16xf32>
    %44 = arith.truncf %43 : vector<32x16xf32> to vector<32x16xbf16>
    %c0_21 = arith.constant 0 : index
    %c0_22 = arith.constant 0 : index
    %c0_23 = arith.constant 0 : index
    %c0_24 = arith.constant 0 : index
    %45 = vector.load %arg9[%c0_21, %c0_22, %c0_23, %c0_24] : memref<1x4x32x16xbf16, #tpu.memory_space<vmem>>, vector<1x1x32x16xbf16>
    %46 = vector.shape_cast %45 : vector<1x1x32x16xbf16> to vector<32x16xbf16>
    %47 = vector.shape_cast %44 : vector<32x16xbf16> to vector<1x1x32x16xbf16>
    tpu.vector_store %arg9[%c0_21, %c0_22, %c0_23, %c0_24], %47 {strides = array<i32>} : memref<1x4x32x16xbf16, #tpu.memory_space<vmem>>, vector<1x1x32x16xbf16>,
    %48 = vector.extract_strided_slice %34 {offsets = [0, 0], sizes = [32, 8], strides = [1, 1]} : vector<32x16xf32> to vector<32x8xf32>
    %49 = vector.extract_strided_slice %34 {offsets = [0, 8], sizes = [32, 8], strides = [1, 1]} : vector<32x16xf32> to vector<32x8xf32>
    %50 = arith.mulf %48, %8 : vector<32x8xf32>
    %51 = arith.mulf %49, %9 : vector<32x8xf32>
    %52 = arith.addf %50, %51 : vector<32x8xf32>
    %53 = arith.mulf %49, %8 : vector<32x8xf32>
    %54 = arith.mulf %48, %9 : vector<32x8xf32>
    %55 = arith.subf %53, %54 : vector<32x8xf32>
    %56 = tpu.concatenate %52, %55 in 1 : vector<32x8xf32>, vector<32x8xf32> -> vector<32x16xf32>
    %57 = arith.truncf %56 : vector<32x16xf32> to vector<32x16xbf16>
    %c0_25 = arith.constant 0 : index
    %c0_26 = arith.constant 0 : index
    %c0_27 = arith.constant 0 : index
    %c0_28 = arith.constant 0 : index
    %58 = vector.load %arg10[%c0_25, %c0_26, %c0_27, %c0_28] : memref<1x4x32x16xbf16, #tpu.memory_space<vmem>>, vector<1x1x32x16xbf16>
    %59 = vector.shape_cast %58 : vector<1x1x32x16xbf16> to vector<32x16xbf16>
    %60 = vector.shape_cast %57 : vector<32x16xbf16> to vector<1x1x32x16xbf16>
    tpu.vector_store %arg10[%c0_25, %c0_26, %c0_27, %c0_28], %60 {strides = array<i32>} : memref<1x4x32x16xbf16, #tpu.memory_space<vmem>>, vector<1x1x32x16xbf16>,
    %61 = arith.truncf %12 : vector<32x16xf32> to vector<32x16xbf16>
    %c0_29 = arith.constant 0 : index
    %c0_30 = arith.constant 0 : index
    %c0_31 = arith.constant 0 : index
    %c0_32 = arith.constant 0 : index
    %62 = vector.load %arg11[%c0_29, %c0_30, %c0_31, %c0_32] : memref<1x4x32x16xbf16, #tpu.memory_space<vmem>>, vector<1x1x32x16xbf16>
    %63 = vector.shape_cast %62 : vector<1x1x32x16xbf16> to vector<32x16xbf16>
    %64 = vector.shape_cast %61 : vector<32x16xbf16> to vector<1x1x32x16xbf16>
    tpu.vector_store %arg11[%c0_29, %c0_30, %c0_31, %c0_32], %64 {strides = array<i32>} : memref<1x4x32x16xbf16, #tpu.memory_space<vmem>>, vector<1x1x32x16xbf16>,
    %65 = vector.extract_strided_slice %3 {offsets = [0, 16], sizes = [32, 16], strides = [1, 1]} : vector<32x64xf32> to vector<32x16xf32>
    %66 = vector.extract_strided_slice %5 {offsets = [0, 16], sizes = [32, 16], strides = [1, 1]} : vector<32x64xf32> to vector<32x16xf32>
    %67 = vector.extract_strided_slice %7 {offsets = [0, 16], sizes = [32, 16], strides = [1, 1]} : vector<32x64xf32> to vector<32x16xf32>
    %68 = arith.mulf %65, %65 : vector<32x16xf32>
    %cst_33 = arith.constant dense<0.000000e+00> : vector<32xf32>
    %69 = vector.multi_reduction <add>, %68, %cst_33 [1] : vector<32x16xf32> to vector<32xf32>
    %70 = vector.shape_cast %69 : vector<32xf32> to vector<32x1xf32>
    %cst_34 = arith.constant 1.600000e+01 : f32
    %71 = vector.broadcast %cst_34 : f32 to vector<32x1xf32>
    %72 = arith.divf %70, %71 : vector<32x1xf32>
    %cst_35 = arith.constant 1.1920929E-7 : f32
    %73 = vector.broadcast %cst_35 : f32 to vector<32x1xf32>
    %74 = arith.addf %72, %73 : vector<32x1xf32>
    %75 = math.rsqrt %74 : vector<32x1xf32>
    %cst_36 = arith.constant 2.500000e-01 : f32
    %76 = vector.broadcast %cst_36 : f32 to vector<32x1xf32>
    %77 = arith.mulf %75, %76 : vector<32x1xf32>
    %78 = vector.broadcast %77 : vector<32x1xf32> to vector<32x16xf32>
    %79 = arith.mulf %65, %78 : vector<32x16xf32>
    %80 = arith.mulf %66, %66 : vector<32x16xf32>
    %cst_37 = arith.constant dense<0.000000e+00> : vector<32xf32>
    %81 = vector.multi_reduction <add>, %80, %cst_37 [1] : vector<32x16xf32> to vector<32xf32>
    %82 = vector.shape_cast %81 : vector<32xf32> to vector<32x1xf32>
    %cst_38 = arith.constant 1.600000e+01 : f32
    %83 = vector.broadcast %cst_38 : f32 to vector<32x1xf32>
    %84 = arith.divf %82, %83 : vector<32x1xf32>
    %cst_39 = arith.constant 1.1920929E-7 : f32
    %85 = vector.broadcast %cst_39 : f32 to vector<32x1xf32>
    %86 = arith.addf %84, %85 : vector<32x1xf32>
    %87 = math.rsqrt %86 : vector<32x1xf32>
    %88 = vector.broadcast %87 : vector<32x1xf32> to vector<32x16xf32>
    %89 = arith.mulf %66, %88 : vector<32x16xf32>
    %90 = vector.extract_strided_slice %79 {offsets = [0, 0], sizes = [32, 8], strides = [1, 1]} : vector<32x16xf32> to vector<32x8xf32>
    %91 = vector.extract_strided_slice %79 {offsets = [0, 8], sizes = [32, 8], strides = [1, 1]} : vector<32x16xf32> to vector<32x8xf32>
    %92 = arith.mulf %90, %8 : vector<32x8xf32>
    %93 = arith.mulf %91, %9 : vector<32x8xf32>
    %94 = arith.addf %92, %93 : vector<32x8xf32>
    %95 = arith.mulf %91, %8 : vector<32x8xf32>
    %96 = arith.mulf %90, %9 : vector<32x8xf32>
    %97 = arith.subf %95, %96 : vector<32x8xf32>
    %98 = tpu.concatenate %94, %97 in 1 : vector<32x8xf32>, vector<32x8xf32> -> vector<32x16xf32>
    %99 = arith.truncf %98 : vector<32x16xf32> to vector<32x16xbf16>
    %c0_40 = arith.constant 0 : index
    %c1 = arith.constant 1 : index
    %c0_41 = arith.constant 0 : index
    %c0_42 = arith.constant 0 : index
    %100 = vector.load %arg9[%c0_40, %c1, %c0_41, %c0_42] : memref<1x4x32x16xbf16, #tpu.memory_space<vmem>>, vector<1x1x32x16xbf16>
    %101 = vector.shape_cast %100 : vector<1x1x32x16xbf16> to vector<32x16xbf16>
    %102 = vector.shape_cast %99 : vector<32x16xbf16> to vector<1x1x32x16xbf16>
    tpu.vector_store %arg9[%c0_40, %c1, %c0_41, %c0_42], %102 {strides = array<i32>} : memref<1x4x32x16xbf16, #tpu.memory_space<vmem>>, vector<1x1x32x16xbf16>,
    %103 = vector.extract_strided_slice %89 {offsets = [0, 0], sizes = [32, 8], strides = [1, 1]} : vector<32x16xf32> to vector<32x8xf32>
    %104 = vector.extract_strided_slice %89 {offsets = [0, 8], sizes = [32, 8], strides = [1, 1]} : vector<32x16xf32> to vector<32x8xf32>
    %105 = arith.mulf %103, %8 : vector<32x8xf32>
    %106 = arith.mulf %104, %9 : vector<32x8xf32>
    %107 = arith.addf %105, %106 : vector<32x8xf32>
    %108 = arith.mulf %104, %8 : vector<32x8xf32>
    %109 = arith.mulf %103, %9 : vector<32x8xf32>
    %110 = arith.subf %108, %109 : vector<32x8xf32>
    %111 = tpu.concatenate %107, %110 in 1 : vector<32x8xf32>, vector<32x8xf32> -> vector<32x16xf32>
    %112 = arith.truncf %111 : vector<32x16xf32> to vector<32x16xbf16>
    %c0_43 = arith.constant 0 : index
    %c1_44 = arith.constant 1 : index
    %c0_45 = arith.constant 0 : index
    %c0_46 = arith.constant 0 : index
    %113 = vector.load %arg10[%c0_43, %c1_44, %c0_45, %c0_46] : memref<1x4x32x16xbf16, #tpu.memory_space<vmem>>, vector<1x1x32x16xbf16>
    %114 = vector.shape_cast %113 : vector<1x1x32x16xbf16> to vector<32x16xbf16>
    %115 = vector.shape_cast %112 : vector<32x16xbf16> to vector<1x1x32x16xbf16>
    tpu.vector_store %arg10[%c0_43, %c1_44, %c0_45, %c0_46], %115 {strides = array<i32>} : memref<1x4x32x16xbf16, #tpu.memory_space<vmem>>, vector<1x1x32x16xbf16>,
    %116 = arith.truncf %67 : vector<32x16xf32> to vector<32x16xbf16>
    %c0_47 = arith.constant 0 : index
    %c1_48 = arith.constant 1 : index
    %c0_49 = arith.constant 0 : index
    %c0_50 = arith.constant 0 : index
    %117 = vector.load %arg11[%c0_47, %c1_48, %c0_49, %c0_50] : memref<1x4x32x16xbf16, #tpu.memory_space<vmem>>, vector<1x1x32x16xbf16>
    %118 = vector.shape_cast %117 : vector<1x1x32x16xbf16> to vector<32x16xbf16>
    %119 = vector.shape_cast %116 : vector<32x16xbf16> to vector<1x1x32x16xbf16>
    tpu.vector_store %arg11[%c0_47, %c1_48, %c0_49, %c0_50], %119 {strides = array<i32>} : memref<1x4x32x16xbf16, #tpu.memory_space<vmem>>, vector<1x1x32x16xbf16>,
    %120 = vector.extract_strided_slice %3 {offsets = [0, 32], sizes = [32, 16], strides = [1, 1]} : vector<32x64xf32> to vector<32x16xf32>
    %121 = vector.extract_strided_slice %5 {offsets = [0, 32], sizes = [32, 16], strides = [1, 1]} : vector<32x64xf32> to vector<32x16xf32>
    %122 = vector.extract_strided_slice %7 {offsets = [0, 32], sizes = [32, 16], strides = [1, 1]} : vector<32x64xf32> to vector<32x16xf32>
    %123 = arith.mulf %120, %120 : vector<32x16xf32>
    %cst_51 = arith.constant dense<0.000000e+00> : vector<32xf32>
    %124 = vector.multi_reduction <add>, %123, %cst_51 [1] : vector<32x16xf32> to vector<32xf32>
    %125 = vector.shape_cast %124 : vector<32xf32> to vector<32x1xf32>
    %cst_52 = arith.constant 1.600000e+01 : f32
    %126 = vector.broadcast %cst_52 : f32 to vector<32x1xf32>
    %127 = arith.divf %125, %126 : vector<32x1xf32>
    %cst_53 = arith.constant 1.1920929E-7 : f32
    %128 = vector.broadcast %cst_53 : f32 to vector<32x1xf32>
    %129 = arith.addf %127, %128 : vector<32x1xf32>
    %130 = math.rsqrt %129 : vector<32x1xf32>
    %cst_54 = arith.constant 2.500000e-01 : f32
    %131 = vector.broadcast %cst_54 : f32 to vector<32x1xf32>
    %132 = arith.mulf %130, %131 : vector<32x1xf32>
    %133 = vector.broadcast %132 : vector<32x1xf32> to vector<32x16xf32>
    %134 = arith.mulf %120, %133 : vector<32x16xf32>
    %135 = arith.mulf %121, %121 : vector<32x16xf32>
    %cst_55 = arith.constant dense<0.000000e+00> : vector<32xf32>
    %136 = vector.multi_reduction <add>, %135, %cst_55 [1] : vector<32x16xf32> to vector<32xf32>
    %137 = vector.shape_cast %136 : vector<32xf32> to vector<32x1xf32>
    %cst_56 = arith.constant 1.600000e+01 : f32
    %138 = vector.broadcast %cst_56 : f32 to vector<32x1xf32>
    %139 = arith.divf %137, %138 : vector<32x1xf32>
    %cst_57 = arith.constant 1.1920929E-7 : f32
    %140 = vector.broadcast %cst_57 : f32 to vector<32x1xf32>
    %141 = arith.addf %139, %140 : vector<32x1xf32>
    %142 = math.rsqrt %141 : vector<32x1xf32>
    %143 = vector.broadcast %142 : vector<32x1xf32> to vector<32x16xf32>
    %144 = arith.mulf %121, %143 : vector<32x16xf32>
    %145 = vector.extract_strided_slice %134 {offsets = [0, 0], sizes = [32, 8], strides = [1, 1]} : vector<32x16xf32> to vector<32x8xf32>
    %146 = vector.extract_strided_slice %134 {offsets = [0, 8], sizes = [32, 8], strides = [1, 1]} : vector<32x16xf32> to vector<32x8xf32>
    %147 = arith.mulf %145, %8 : vector<32x8xf32>
    %148 = arith.mulf %146, %9 : vector<32x8xf32>
    %149 = arith.addf %147, %148 : vector<32x8xf32>
    %150 = arith.mulf %146, %8 : vector<32x8xf32>
    %151 = arith.mulf %145, %9 : vector<32x8xf32>
    %152 = arith.subf %150, %151 : vector<32x8xf32>
    %153 = tpu.concatenate %149, %152 in 1 : vector<32x8xf32>, vector<32x8xf32> -> vector<32x16xf32>
    %154 = arith.truncf %153 : vector<32x16xf32> to vector<32x16xbf16>
    %c0_58 = arith.constant 0 : index
    %c2 = arith.constant 2 : index
    %c0_59 = arith.constant 0 : index
    %c0_60 = arith.constant 0 : index
    %155 = vector.load %arg9[%c0_58, %c2, %c0_59, %c0_60] : memref<1x4x32x16xbf16, #tpu.memory_space<vmem>>, vector<1x1x32x16xbf16>
    %156 = vector.shape_cast %155 : vector<1x1x32x16xbf16> to vector<32x16xbf16>
    %157 = vector.shape_cast %154 : vector<32x16xbf16> to vector<1x1x32x16xbf16>
    tpu.vector_store %arg9[%c0_58, %c2, %c0_59, %c0_60], %157 {strides = array<i32>} : memref<1x4x32x16xbf16, #tpu.memory_space<vmem>>, vector<1x1x32x16xbf16>,
    %158 = vector.extract_strided_slice %144 {offsets = [0, 0], sizes = [32, 8], strides = [1, 1]} : vector<32x16xf32> to vector<32x8xf32>
    %159 = vector.extract_strided_slice %144 {offsets = [0, 8], sizes = [32, 8], strides = [1, 1]} : vector<32x16xf32> to vector<32x8xf32>
    %160 = arith.mulf %158, %8 : vector<32x8xf32>
    %161 = arith.mulf %159, %9 : vector<32x8xf32>
    %162 = arith.addf %160, %161 : vector<32x8xf32>
    %163 = arith.mulf %159, %8 : vector<32x8xf32>
    %164 = arith.mulf %158, %9 : vector<32x8xf32>
    %165 = arith.subf %163, %164 : vector<32x8xf32>
    %166 = tpu.concatenate %162, %165 in 1 : vector<32x8xf32>, vector<32x8xf32> -> vector<32x16xf32>
    %167 = arith.truncf %166 : vector<32x16xf32> to vector<32x16xbf16>
    %c0_61 = arith.constant 0 : index
    %c2_62 = arith.constant 2 : index
    %c0_63 = arith.constant 0 : index
    %c0_64 = arith.constant 0 : index
    %168 = vector.load %arg10[%c0_61, %c2_62, %c0_63, %c0_64] : memref<1x4x32x16xbf16, #tpu.memory_space<vmem>>, vector<1x1x32x16xbf16>
    %169 = vector.shape_cast %168 : vector<1x1x32x16xbf16> to vector<32x16xbf16>
    %170 = vector.shape_cast %167 : vector<32x16xbf16> to vector<1x1x32x16xbf16>
    tpu.vector_store %arg10[%c0_61, %c2_62, %c0_63, %c0_64], %170 {strides = array<i32>} : memref<1x4x32x16xbf16, #tpu.memory_space<vmem>>, vector<1x1x32x16xbf16>,
    %171 = arith.truncf %122 : vector<32x16xf32> to vector<32x16xbf16>
    %c0_65 = arith.constant 0 : index
    %c2_66 = arith.constant 2 : index
    %c0_67 = arith.constant 0 : index
    %c0_68 = arith.constant 0 : index
    %172 = vector.load %arg11[%c0_65, %c2_66, %c0_67, %c0_68] : memref<1x4x32x16xbf16, #tpu.memory_space<vmem>>, vector<1x1x32x16xbf16>
    %173 = vector.shape_cast %172 : vector<1x1x32x16xbf16> to vector<32x16xbf16>
    %174 = vector.shape_cast %171 : vector<32x16xbf16> to vector<1x1x32x16xbf16>
    tpu.vector_store %arg11[%c0_65, %c2_66, %c0_67, %c0_68], %174 {strides = array<i32>} : memref<1x4x32x16xbf16, #tpu.memory_space<vmem>>, vector<1x1x32x16xbf16>,
    %175 = vector.extract_strided_slice %3 {offsets = [0, 48], sizes = [32, 16], strides = [1, 1]} : vector<32x64xf32> to vector<32x16xf32>
    %176 = vector.extract_strided_slice %5 {offsets = [0, 48], sizes = [32, 16], strides = [1, 1]} : vector<32x64xf32> to vector<32x16xf32>
    %177 = vector.extract_strided_slice %7 {offsets = [0, 48], sizes = [32, 16], strides = [1, 1]} : vector<32x64xf32> to vector<32x16xf32>
    %178 = arith.mulf %175, %175 : vector<32x16xf32>
    %cst_69 = arith.constant dense<0.000000e+00> : vector<32xf32>
    %179 = vector.multi_reduction <add>, %178, %cst_69 [1] : vector<32x16xf32> to vector<32xf32>
    %180 = vector.shape_cast %179 : vector<32xf32> to vector<32x1xf32>
    %cst_70 = arith.constant 1.600000e+01 : f32
    %181 = vector.broadcast %cst_70 : f32 to vector<32x1xf32>
    %182 = arith.divf %180, %181 : vector<32x1xf32>
    %cst_71 = arith.constant 1.1920929E-7 : f32
    %183 = vector.broadcast %cst_71 : f32 to vector<32x1xf32>
    %184 = arith.addf %182, %183 : vector<32x1xf32>
    %185 = math.rsqrt %184 : vector<32x1xf32>
    %cst_72 = arith.constant 2.500000e-01 : f32
    %186 = vector.broadcast %cst_72 : f32 to vector<32x1xf32>
    %187 = arith.mulf %185, %186 : vector<32x1xf32>
    %188 = vector.broadcast %187 : vector<32x1xf32> to vector<32x16xf32>
    %189 = arith.mulf %175, %188 : vector<32x16xf32>
    %190 = arith.mulf %176, %176 : vector<32x16xf32>
    %cst_73 = arith.constant dense<0.000000e+00> : vector<32xf32>
    %191 = vector.multi_reduction <add>, %190, %cst_73 [1] : vector<32x16xf32> to vector<32xf32>
    %192 = vector.shape_cast %191 : vector<32xf32> to vector<32x1xf32>
    %cst_74 = arith.constant 1.600000e+01 : f32
    %193 = vector.broadcast %cst_74 : f32 to vector<32x1xf32>
    %194 = arith.divf %192, %193 : vector<32x1xf32>
    %cst_75 = arith.constant 1.1920929E-7 : f32
    %195 = vector.broadcast %cst_75 : f32 to vector<32x1xf32>
    %196 = arith.addf %194, %195 : vector<32x1xf32>
    %197 = math.rsqrt %196 : vector<32x1xf32>
    %198 = vector.broadcast %197 : vector<32x1xf32> to vector<32x16xf32>
    %199 = arith.mulf %176, %198 : vector<32x16xf32>
    %200 = vector.extract_strided_slice %189 {offsets = [0, 0], sizes = [32, 8], strides = [1, 1]} : vector<32x16xf32> to vector<32x8xf32>
    %201 = vector.extract_strided_slice %189 {offsets = [0, 8], sizes = [32, 8], strides = [1, 1]} : vector<32x16xf32> to vector<32x8xf32>
    %202 = arith.mulf %200, %8 : vector<32x8xf32>
    %203 = arith.mulf %201, %9 : vector<32x8xf32>
    %204 = arith.addf %202, %203 : vector<32x8xf32>
    %205 = arith.mulf %201, %8 : vector<32x8xf32>
    %206 = arith.mulf %200, %9 : vector<32x8xf32>
    %207 = arith.subf %205, %206 : vector<32x8xf32>
    %208 = tpu.concatenate %204, %207 in 1 : vector<32x8xf32>, vector<32x8xf32> -> vector<32x16xf32>
    %209 = arith.truncf %208 : vector<32x16xf32> to vector<32x16xbf16>
    %c0_76 = arith.constant 0 : index
    %c3 = arith.constant 3 : index
    %c0_77 = arith.constant 0 : index
    %c0_78 = arith.constant 0 : index
    %210 = vector.load %arg9[%c0_76, %c3, %c0_77, %c0_78] : memref<1x4x32x16xbf16, #tpu.memory_space<vmem>>, vector<1x1x32x16xbf16>
    %211 = vector.shape_cast %210 : vector<1x1x32x16xbf16> to vector<32x16xbf16>
    %212 = vector.shape_cast %209 : vector<32x16xbf16> to vector<1x1x32x16xbf16>
    tpu.vector_store %arg9[%c0_76, %c3, %c0_77, %c0_78], %212 {strides = array<i32>} : memref<1x4x32x16xbf16, #tpu.memory_space<vmem>>, vector<1x1x32x16xbf16>,
    %213 = vector.extract_strided_slice %199 {offsets = [0, 0], sizes = [32, 8], strides = [1, 1]} : vector<32x16xf32> to vector<32x8xf32>
    %214 = vector.extract_strided_slice %199 {offsets = [0, 8], sizes = [32, 8], strides = [1, 1]} : vector<32x16xf32> to vector<32x8xf32>
    %215 = arith.mulf %213, %8 : vector<32x8xf32>
    %216 = arith.mulf %214, %9 : vector<32x8xf32>
    %217 = arith.addf %215, %216 : vector<32x8xf32>
    %218 = arith.mulf %214, %8 : vector<32x8xf32>
    %219 = arith.mulf %213, %9 : vector<32x8xf32>
    %220 = arith.subf %218, %219 : vector<32x8xf32>
    %221 = tpu.concatenate %217, %220 in 1 : vector<32x8xf32>, vector<32x8xf32> -> vector<32x16xf32>
    %222 = arith.truncf %221 : vector<32x16xf32> to vector<32x16xbf16>
    %c0_79 = arith.constant 0 : index
    %c3_80 = arith.constant 3 : index
    %c0_81 = arith.constant 0 : index
    %c0_82 = arith.constant 0 : index
    %223 = vector.load %arg10[%c0_79, %c3_80, %c0_81, %c0_82] : memref<1x4x32x16xbf16, #tpu.memory_space<vmem>>, vector<1x1x32x16xbf16>
    %224 = vector.shape_cast %223 : vector<1x1x32x16xbf16> to vector<32x16xbf16>
    %225 = vector.shape_cast %222 : vector<32x16xbf16> to vector<1x1x32x16xbf16>
    tpu.vector_store %arg10[%c0_79, %c3_80, %c0_81, %c0_82], %225 {strides = array<i32>} : memref<1x4x32x16xbf16, #tpu.memory_space<vmem>>, vector<1x1x32x16xbf16>,
    %226 = arith.truncf %177 : vector<32x16xf32> to vector<32x16xbf16>
    %c0_83 = arith.constant 0 : index
    %c3_84 = arith.constant 3 : index
    %c0_85 = arith.constant 0 : index
    %c0_86 = arith.constant 0 : index
    %227 = vector.load %arg11[%c0_83, %c3_84, %c0_85, %c0_86] : memref<1x4x32x16xbf16, #tpu.memory_space<vmem>>, vector<1x1x32x16xbf16>
    %228 = vector.shape_cast %227 : vector<1x1x32x16xbf16> to vector<32x16xbf16>
    %229 = vector.shape_cast %226 : vector<32x16xbf16> to vector<1x1x32x16xbf16>
    tpu.vector_store %arg11[%c0_83, %c3_84, %c0_85, %c0_86], %229 {strides = array<i32>} : memref<1x4x32x16xbf16, #tpu.memory_space<vmem>>, vector<1x1x32x16xbf16>,
    return
  }
  func.func @transform_0(%arg0: i32, %arg1: i32, %arg2: i32) -> (i32, i32, i32) {
    %c0_i32 = arith.constant 0 : i32
    %c0_i32_0 = arith.constant 0 : i32
    return %arg1, %arg2, %c0_i32 : i32, i32, i32
  }
  func.func @transform_1(%arg0: i32, %arg1: i32, %arg2: i32) -> (i32, i32) {
    %c0_i32 = arith.constant 0 : i32
    %c0_i32_0 = arith.constant 0 : i32
    return %c0_i32, %arg0 : i32, i32
  }
  func.func @transform_2(%arg0: i32, %arg1: i32, %arg2: i32) -> (i32, i32) {
    %c0_i32 = arith.constant 0 : i32
    %c0_i32_0 = arith.constant 0 : i32
    return %c0_i32, %arg0 : i32, i32
  }
  func.func @transform_3(%arg0: i32, %arg1: i32, %arg2: i32) -> (i32, i32) {
    %c0_i32 = arith.constant 0 : i32
    %c0_i32_0 = arith.constant 0 : i32
    return %c0_i32, %arg0 : i32, i32
  }
  func.func @transform_4(%arg0: i32, %arg1: i32, %arg2: i32) -> (i32, i32) {
    %c0_i32 = arith.constant 0 : i32
    %c0_i32_0 = arith.constant 0 : i32
    return %arg2, %c0_i32 : i32, i32
  }
  func.func @transform_5(%arg0: i32, %arg1: i32, %arg2: i32) -> (i32, i32) {
    %c0_i32 = arith.constant 0 : i32
    %c0_i32_0 = arith.constant 0 : i32
    return %arg2, %c0_i32 : i32, i32
  }
  func.func @transform_6(%arg0: i32, %arg1: i32, %arg2: i32) -> (i32, i32, i32, i32) {
    %c0_i32 = arith.constant 0 : i32
    %c0_i32_0 = arith.constant 0 : i32
    return %arg1, %arg0, %arg2, %c0_i32 : i32, i32, i32, i32
  }
  func.func @transform_7(%arg0: i32, %arg1: i32, %arg2: i32) -> (i32, i32, i32, i32) {
    %c0_i32 = arith.constant 0 : i32
    %c0_i32_0 = arith.constant 0 : i32
    return %arg1, %arg0, %arg2, %c0_i32 : i32, i32, i32, i32
  }
  func.func @transform_8(%arg0: i32, %arg1: i32, %arg2: i32) -> (i32, i32, i32, i32) {
    %c0_i32 = arith.constant 0 : i32
    %c0_i32_0 = arith.constant 0 : i32
    return %arg1, %arg0, %arg2, %c0_i32 : i32, i32, i32, i32
  }
}

</mosaic_0001>

<bundles_post_ra>
// kernel: tpu_custom_call.1
= control target key start
LH: loop header
LB: loop body
LE: loop exit
PB: predicated region body
PF: predicated region fallthrough
CT: control target
= control target key end

     0   :  { %14 = vsyncpa [#allocation3], 0  ;;  %s4512_s0 = inlined_call_operand.vmem [shape: bf16[2,32,64], index: 0, kind: input, shape index: {}]   ;;  %s4513_s1 = inlined_call_operand.vmem [shape: bf16[64,64], index: 1, kind: input, shape index: {}]   ;;  %s4514_s2 = inlined_call_operand.hbm [shape: bf16[64,64], index: 2, kind: input, shape index: {}]   ;;  %s4515_s3 = inlined_call_operand.hbm [shape: bf16[64,64], index: 3, kind: input, shape index: {}]   ;;  %s4516_s4 = inlined_call_operand.vmem [shape: f32[32,8], index: 4, kind: input, shape index: {}]   ;;  %s4517_s5 = inlined_call_operand.vmem [shape: f32[32,8], index: 5, kind: input, shape index: {}]   ;;  %s4518_s6 = inlined_call_operand.vmem [shape: bf16[2,4,32,16], index: 6, kind: output, shape index: {0}]   ;;  %s4519_s7 = inlined_call_operand.vmem [shape: bf16[2,4,32,16], index: 7, kind: output, shape index: {1}]   ;;  %s4520_s8 = inlined_call_operand.vmem [shape: bf16[2,4,32,16], index: 8, kind: output, shape index: {2}]  }
   0x1   :  { %15 = vsyncpa [#allocation5], 0  ;;  %s3208_s27 = smov 0   ;;  %s3210_s28 = smov 0  }
   0x2   :  { %s3212_s29 = smov 0  }
   0x3 LB: > { %s2655_s30 = sadd.s32 4294967295, %s3145_s29   ;;  %s36_s9 = sadd.s32 1, %s3141_s28  ;;  %s3145_s29 = sphi %s3212_s29, %s21_s29   ;;  %s3141_s28 = sphi %s3210_s28, %s4577_s28   ;;  %s3137_s27 = sphi %s3208_s27, %s4576_s27  }
   0x4   : > { %p38_p0 = scmp.ge.s32.totalorder %s36_s9, 2  ;;  %p2657_p1 = scmp.ge.s32.totalorder %s3145_s29, 1 }
   0x5   : > { %p293_p2 = scmp.lt.s32.totalorder %s3145_s29, 3  ;;  %p3233_p4 = scmp.eq.s32.totalorder %s2655_s30, 0 }
   0x6   : > { %s4579_s9 = smov (%p38_p0, %s36_s9), 0  ;;  %s313_s14 = sshll.u32 %s4514_s2, 4  ;;  %s314_s14 = int_to_ptr.hbm [resolvable:$true] %s313_s14 }
   0x7   : > { %p3229_p3 = pnand %p2657_p1, %p293_p2  ;;  %s3147_s15 = smov [#allocation2]  }
   0x8   : > { %s315_s16 = sshll.u32 %s3147_s15, 4  ;;  %s329_s19 = sshll.u32 %s4515_s3, 4  ;;  %s316_s16 = int_to_ptr.vmem [resolvable:$true] %s315_s16  ;;  %s330_s19 = int_to_ptr.hbm [resolvable:$true] %s329_s19 }
   0x9   : > { %p2805_p5 = pneg %p3229_p3  ;;  %s3148_s20 = smov 64  }
   0xa   : > { %s3149_s21 = smov 4   ;;  %s3150_s22 = smov [#allocation4]  }
   0xb   : > { %p2806_p6 = pnand %p3233_p4, %p2805_p5  ;;  %s331_s23 = sshll.u32 %s3150_s22, 4  ;;  %s332_s23 = int_to_ptr.vmem [resolvable:$true] %s331_s23 }
   0xc   : > { %378 = sbr.rel (%p3229_p3) target bundleno = 2032 (0x7f0), region = 44 }
   0xd   : > { %2808 = dma.hbm_to_vmem [thread:$0]  (!%p2806_p6), %s314_s14, 512, %s316_s16, [#allocation3], %s3148_s20, %s3148_s20, %s3149_s21  }
   0xe   : > { %2811 = dma.hbm_to_vmem [thread:$0]  (!%p2806_p6), %s330_s19, 512, %s332_s23, [#allocation5], %s3148_s20, %s3148_s20, %s3149_s21  }
  0x11   : > { %3128 = dma.done.wait (%p3233_p4), [#allocation3], 512  }
  0x12   : > { %3130 = vsyncadd (%p3233_p4), [#allocation3], 4294966784 }
  0x13   : > { %3132 = dma.done.wait (%p3233_p4), [#allocation5], 512  }
  0x14   : > { %3134 = vsyncadd (%p3233_p4), [#allocation5], 4294966784  ;;  %p474_p7 = scmp.lt.s32.totalorder %s3137_s27, 1  ;;  %v2784_v0 = vld [vmem:[%s4513_s1 + $0x18] sm:$0xff]  ;;  %v2783_v2 = vld [vmem:[%s4513_s1 + $0x10] sm:$0xff]  ;;  %s3151_s12 = smov 8  }
  0x15   : > { %v2788_v1 = vld [vmem:[#allocation2 + $0x18] sm:$0xff]  ;;  %605 = vmatpush.bf16.msra.mxu0 %v2784_v0  ;;  %v2787_v3 = vld [vmem:[#allocation2 + $0x10] sm:$0xff]  ;;  %2793 = vmatpush.bf16.msra.mxu3 %v2784_v0  ;;  %v3270_v5 = vld [vmem:[%s4517_s5 + $0x8] sm:$0xff]  ;;  %vm594_vm0 = vcmask 523264   ;;  %s3152_s14 = smov 16   ;;  %vm734_vm1 = vcmask 130048  }
  0x16   : > { %656 = vmatpush.bf16.msra.mxu1 %v2788_v1  ;;  %s4581_s27 = smov (!%p474_p7, %s3137_s27), 1  ;;  %v2792_v4 = vld [vmem:[#allocation4 + $0x18] sm:$0xff]  ;;  %v2791_v6 = vld [vmem:[#allocation4 + $0x10] sm:$0xff]  ;;  %888 = vrot.lane.b32.xlu0 %v3270_v5, %s3151_s12  ;;  %v2782_v7 = vld [vmem:[%s4513_s1 + $0x8] sm:$0xff]  ;;  %s3154_s20 = smov 112   ;;  %vm975_vm2 = vcmask 125952  }
  0x17   : > { %707 = vmatpush.bf16.msra.mxu2 %v2792_v4  ;;  %v2786_v8 = vld [vmem:[#allocation2 + $0x8] sm:$0xff]  ;;  %v3280_v9 = vld [vmem:[%s4517_s5 + $0x10] sm:$0xff]  ;;  %s2775_s17 = sshll.u32 %s4581_s27, 4  ;;  %v3286_v10 = vld [vmem:[%s4517_s5] sm:$0xff]  ;;  %s3374_s21 = sshll.u32 %s4581_s27, 6 }
  0x18   : > { %890 = vrot.lane.b32.xlu1 %v3280_v9, %s3151_s12  ;;  %886 = vrot.lane.b32.xlu2 %v3286_v10, %s3151_s12  ;;  %v2790_v11 = vld [vmem:[#allocation4 + $0x8] sm:$0xff]  ;;  %v2781_v12 = vld [vmem:[%s4513_s1] sm:$0xff]  ;;  %s481_s24 = scalar_lea.vmem %s4512_s0, %s2775_s17  ;;  %v3301_v14 = vld [vmem:[%s4516_s4 + $0x10] sm:$0xff]  ;;  %s3153_s17 = smov 24  }
  0x19   : > { %606 = vmatpush.bf16.msra.mxu0 %v2783_v2  ;;  %2794 = vmatpush.bf16.msra.mxu3 %v2783_v2  ;;  %v2785_v13 = vld [vmem:[#allocation2] sm:$0xff]  ;;  %v3306_v15 = vld [vmem:[%s4516_s4 + $0x8] sm:$0xff]  ;;  %v3313_v19 = vld [vmem:[%s4517_s5 + $0x18] sm:$0xff]  ;;  %s3155_s25 = smov 96   ;;  %s3157_s27 = smov 120  }
  0x1a   : > { %657 = vmatpush.bf16.msra.mxu1 %v2787_v3  ;;  %v2779_v16 = vld [vmem:[%s481_s24] sm:$0xff]  ;;  %v2780_v18 = vld [vmem:[%s481_s24 + $0x8] sm:$0xff]  ;;  %v3336_v21 = vld [vmem:[%s4516_s4 + $0x18] sm:$0xff]  ;;  %s3380_s24 = scalar_lea.vmem %s4520_s8, %s3374_s21  ;;  %s3658_s10 = scalar_lea.vmem %s4518_s6, %s3374_s21 }
  0x1b   : > { %708 = vmatpush.bf16.msra.mxu2 %v2791_v6  ;;  %v2789_v17 = vld [vmem:[#allocation4] sm:$0xff]  ;;  %s3158_s22 = smov 32   ;;  %s3159_s30 = smov 40  }
  0x1c   : > { %v3327_v20 = vld [vmem:[%s4516_s4] sm:$0xff] }
  0x1d   : > { %607 = vmatpush.bf16.msra.mxu0 %v2782_v7  ;;  %2795 = vmatpush.bf16.msra.mxu3 %v2782_v7 }
  0x1e   : > { %658 = vmatpush.bf16.msra.mxu1 %v2786_v8  ;;  %930 = vrot.lane.b32.xlu0 %v3301_v14, %s3151_s12 }
  0x1f   : > { %709 = vmatpush.bf16.msra.mxu2 %v2790_v11 }
  0x20   : > { %928 = vrot.lane.b32.xlu1 %v3306_v15, %s3151_s12  ;;  %892 = vrot.lane.b32.xlu2 %v3313_v19, %s3151_s12 }
  0x21   : > { %608 = vmatpush.bf16.msra.mxu0 %v2781_v12  ;;  %2796 = vmatpush.bf16.msra.mxu3 %v2781_v12 }
  0x22   : > { %659 = vmatpush.bf16.msra.mxu1 %v2785_v13 }
  0x23   : > { %710 = vmatpush.bf16.msra.mxu2 %v2789_v17  ;;  %v3156_v17 = vmov 16.0  }
  0x24   : > { %2699 = vmatmul.msk.bf16.vlgmr.msra.gmra.mxu0 %vm594_vm0, %v2779_v16  ;;  %2700 = vmatmul.msk.bf16.vlgmr.msra.gmra.mxu3 %vm594_vm0, %v2780_v18  ;;  %2976 = vrcp.f32 %v3156_v17 }
  0x25   : > { %2717 = vmatmul.msk.bf16.vlgmr.msra.gmra.mxu1 %vm594_vm0, %v2779_v16 }
  0x26   : > { %2735 = vmatmul.msk.bf16.vlgmr.msra.gmra.mxu2 %vm594_vm0, %v2779_v16  ;;  %1224 = vrot.lane.b32.xlu0 %v3301_v14, %s3152_s14 }
  0x28   : > { %1220 = vrot.lane.b32.xlu1 %v3327_v20, %s3152_s14  ;;  %926 = vrot.lane.b32.xlu2 %v3327_v20, %s3151_s12 }
  0x2e   : > { %1236 = vrot.lane.b32.xlu0 %v3286_v10, %s3153_s17 }
  0x30   : > { %1226 = vrot.lane.b32.xlu1 %v3336_v21, %s3152_s14  ;;  %932 = vrot.lane.b32.xlu2 %v3336_v21, %s3151_s12 }
  0x35   : > { %2718 = vmatmul.msk.bf16.gmra.mxu1 %vm594_vm0, %v2780_v18 }
  0x36   : > { %1242 = vrot.lane.b32.xlu0 %v3313_v19, %s3153_s17  ;;  %2736 = vmatmul.msk.bf16.gmra.mxu2 %vm594_vm0, %v2780_v18 }
  0x38   : > { %1240 = vrot.lane.b32.xlu1 %v3280_v9, %s3153_s17  ;;  %1222 = vrot.lane.b32.xlu2 %v3306_v15, %s3152_s14 }
  0x3e   : > { %1274 = vrot.lane.b32.xlu0 %v3306_v15, %s3153_s17 }
  0x40   : > { %1272 = vrot.lane.b32.xlu1 %v3327_v20, %s3153_s17  ;;  %1238 = vrot.lane.b32.xlu2 %v3270_v5, %s3153_s17 }
  0x46   : > { %1288 = vrot.lane.b32.xlu0 %v3286_v10, %s3152_s14 }
  0x48   : > { %1278 = vrot.lane.b32.xlu1 %v3336_v21, %s3153_s17  ;;  %1276 = vrot.lane.b32.xlu2 %v3301_v14, %s3153_s17 }
  0x4e   : > { %1294 = vrot.lane.b32.xlu0 %v3313_v19, %s3152_s14 }
  0x50   : > { %1292 = vrot.lane.b32.xlu1 %v3280_v9, %s3152_s14  ;;  %1290 = vrot.lane.b32.xlu2 %v3270_v5, %s3152_s14  ;;  %s3695_s14 = scalar_lea.vmem %s4519_s7, %s3374_s21 }
  0x72   : > { %v3448_v47 = vpop.permute.xlu2 %886 }
  0x7a   : > { %v3458_v51 = vpop.permute.xlu2 %892 }
  0x82   : > { %v3466_v55 = vpop.permute.xlu2 %926 }
  0x88   : > { %v3414_v36 = vpop.permute.xlu0 %888 }
  0x8a   : > { %v3460_v52 = vpop.permute.xlu1 %890  ;;  %v3481_v62 = vpop.permute.xlu2 %932 }
  0x90   : > { %v3418_v38 = vpop.permute.xlu0 %930 }
  0x92   : > { %v3470_v57 = vpop.permute.xlu1 %928  ;;  %v3490_v2 = vpop.permute.xlu2 %1222 }
  0x93   : > { %4554 = vst [vmem:[#allocation19_spill] sm:$0xff] %v3490_v2 }
  0x98   : > { %v3428_v41 = vpop.permute.xlu0 %1224 }
  0x99   : > { %4548 = vst [vmem:[#allocation13_spill] sm:$0xff] %v3428_v41 }
  0x9a   : > { %v3486_v63 = vpop.permute.xlu1 %1220  ;;  %v3496_v6 = vpop.permute.xlu2 %1238 }
  0x9b   : > { %4553 = vst [vmem:[#allocation18_spill] sm:$0xff] %v3486_v63 }
  0xa0   : > { %v3434_v42 = vpop.permute.xlu0 %1236 }
  0xa1   : > { %v3355_v22 = vpop.f32.mrf.mxu0 }
  0xa2   : > { %v3357_v23 = vpop.f32.mrf.mxu1  ;;  %v3365_v25 = vmul.f32 %v3355_v22, %v3355_v22  ;;  %v3492_v3 = vpop.permute.xlu1 %1226 }
  0xa3   : > { %v3361_v24 = vmul.f32 %v3357_v23, %v3357_v23  ;;  %4555 = vst [vmem:[#allocation20_spill] sm:$0xff] %v3492_v3  ;;  %v3506_v11 = vpop.permute.xlu2 %1276 }
  0xa4   : > { %4543 = vst [vmem:[#allocation8_spill] sm:$0xff] %v3365_v25  ;;  %1060 = vrot.lane.b32.xlu1 %v3365_v25, %s3154_s20  ;;  %v735_v26 = vsel %vm734_vm1, %v3365_v25, 0.0 }
  0xa5   : > { %1144 = vrot.lane.b32.xlu2 %v3361_v24, %s3154_s20  ;;  %736 = vadd.xlane.f32.xlu0 %v735_v26  ;;  %v814_v37 = vsel %vm734_vm1, %v3361_v24, 0.0  ;;  %4556 = vst [vmem:[#allocation21_spill] sm:$0xff] %v3506_v11 }
  0xa7   : > { %v3396_v31 = vpop.f32.mrf.mxu3 }
  0xa8   : > { %v3400_v32 = vmul.f32 %v3396_v31, %v3396_v31  ;;  %v3446_v46 = vpop.permute.xlu0 %1242 }
  0xa9   : > { %v712_v27 = vpop.f32.mrf.mxu2  ;;  %v3404_v33 = vpop.f32.mrf.mxu0 }
  0xaa   : > { %v3384_v28 = vpack.c.bf16 %v712_v27, %v712_v27  ;;  %4546 = vst [vmem:[#allocation11_spill] sm:$0xff] %v3400_v32  ;;  %v3408_v34 = vmul.f32 %v3404_v33, %v3404_v33  ;;  %v741_v35 = vsel %vm734_vm1, %v3400_v32, 0.0  ;;  %v3420_v39 = vpop.f32.mrf.mxu1  ;;  %v3502_v8 = vpop.permute.xlu1 %1240 }
  0xab   : > { %v3424_v40 = vmul.f32 %v3420_v39, %v3420_v39  ;;  %v3520_v18 = vpop.permute.xlu2 %1290  ;;  %v2977_v27 = vpop.eup %2976 }
  0xac   : > { %4544 = vst [vmem:[#allocation9_spill] sm:$0xff] %v3384_v28  ;;  %v738_v44 = vsel %vm734_vm1, %v3408_v34, 0.0  ;;  %vm752_vm3 = vweird.f32 %v2977_v27 }
  0xad   : > { %1491 = vrot.lane.b32.xlu2 %v3365_v25, %s3155_s25  ;;  %1052 = vst.msk [vmem:[%s3380_s24] sm:$0xf] %vm975_vm2, %v3384_v28  ;;  %v817_v58 = vsel %vm734_vm1, %v3424_v40, 0.0 }
  0xae   : > { %4547 = vst [vmem:[#allocation12_spill] sm:$0xff] %v3408_v34 }
  0xaf   : > { %v3436_v43 = vpop.f32.mrf.mxu3 }
  0xb0   : > { %v3442_v45 = vmul.f32 %v3436_v43, %v3436_v43  ;;  %v3456_v50 = vpop.permute.xlu0 %1274 }
  0xb1   : > { %v714_v29 = vpop.f32.mrf.mxu2  ;;  %4550 = vst [vmem:[#allocation15_spill] sm:$0xff] %v3456_v50 }
  0xb2   : > { %v3389_v30 = vpack.c.bf16 %v714_v29, %v714_v29  ;;  %4549 = vst [vmem:[#allocation14_spill] sm:$0xff] %v3442_v45  ;;  %v3450_v48 = vpop.f32.mrf.mxu1  ;;  %v744_v0 = vsel %vm734_vm1, %v3442_v45, 0.0  ;;  %v3508_v12 = vpop.permute.xlu1 %1272  ;;  %v748_v29 = vmul.f32 16.0, %v2977_v27 }
  0xb3   : > { %v3454_v49 = vmul.f32 %v3450_v48, %v3450_v48  ;;  %4557 = vst [vmem:[#allocation22_spill] sm:$0xff] %v3508_v12 }
  0xb4   : > { %4545 = vst [vmem:[#allocation10_spill] sm:$0xff] %v3389_v30 }
  0xb5   : > { %1053 = vst.msk [vmem:[%s3380_s24 + $0x4] sm:$0xf] %vm975_vm2, %v3389_v30  ;;  %v820_v7 = vsel %vm734_vm1, %v3454_v49, 0.0 }
  0xb8   : > { %v3464_v53 = vpop.permute.xlu0 %1288 }
  0xb9   : > { %1474 = vrot.lane.b32.xlu0 %v3384_v28, %s3154_s20  ;;  %v717_v54 = vpop.f32.mrf.mxu2 }
  0xba   : > { %v3468_v56 = vpack.c.bf16 %v717_v54, %v717_v54  ;;  %v3510_v13 = vpop.f32.mrf.mxu1  ;;  %v3522_v26 = vpop.permute.xlu1 %1278 }
  0xbb   : > { %v3516_v16 = vmul.f32 %v3510_v13, %v3510_v13  ;;  %4558 = vst [vmem:[#allocation23_spill] sm:$0xff] %v3522_v26 }
  0xbc   : > { %4551 = vst [vmem:[#allocation16_spill] sm:$0xff] %v3468_v56 }
  0xbd   : > { %1054 = vst.msk [vmem:[%s3380_s24 + $0x8] sm:$0xf] %vm975_vm2, %v3468_v56 }
  0xc0   : > { %v3479_v61 = vpop.permute.xlu0 %1294 }
  0xc1   : > { %1495 = vrot.lane.b32.xlu0 %v3400_v32, %s3155_s25  ;;  %v719_v59 = vpop.f32.mrf.mxu2 }
  0xc2   : > { %v3477_v60 = vpack.c.bf16 %v719_v59, %v719_v59 }
  0xc4   : > { %4552 = vst [vmem:[#allocation17_spill] sm:$0xff] %v3477_v60 }
  0xc5   : > { %1055 = vst.msk [vmem:[%s3380_s24 + $0xc] sm:$0xf] %vm975_vm2, %v3477_v60 }
  0xc9   : > { %1062 = vrot.lane.b32.xlu0 %v3408_v34, %s3154_s20 }
  0xce   : > { %742 = vadd.xlane.f32.xlu1 %v741_v35 }
  0xd6   : > { %815 = vadd.xlane.f32.xlu2 %v814_v37  ;;  %v749_v37 = vsub.f32 1.0, %v748_v29 }
  0xd8   : > { %v750_v54 = vmul.f32 %v2977_v27, %v749_v37  ;;  %v823_v37 = vsel %vm734_vm1, %v3516_v16, 0.0 }
  0xe7   : > { %1146 = vrot.lane.b32.xlu1 %v3424_v40, %s3154_s20 }
  0xee   : > { %1064 = vrot.lane.b32.xlu2 %v3400_v32, %s3154_s20 }
  0xef   : > { %1493 = vrot.lane.b32.xlu1 %v3408_v34, %s3155_s25 }
  0xf3   : > { %739 = vadd.xlane.f32.xlu0 %v738_v44  ;;  %v3526_v44 = vpop.permute.xlu1 %1292 }
  0xf7   : > { %1066 = vrot.lane.b32.xlu1 %v3442_v45, %s3154_s20 }
  0xff   : > { %v1145_v35 = vpop.permute.xlu2 %1144 }
 0x107   : > { %1148 = vrot.lane.b32.xlu0 %v3454_v49, %s3154_s20  ;;  %v3528_v59 = vpop.permute.xlu2 %1491 }
 0x117   : > { %818 = vadd.xlane.f32.xlu2 %v817_v58  ;;  %v751_v58 = vadd.f32 %v2977_v27, %v750_v54 }
 0x118   : > { %v737_v1 = vpop.xlane.xlu0 %736 }
 0x121   : > { %745 = vadd.xlane.f32.xlu1 %v744_v0  ;;  %v1061_v0 = vpop.permute.xlu1 %1060 }
 0x12b   : > { %v1475_v4 = vpop.permute.xlu0 %1474 }
 0x12c   : > { %2745 = vst.msk [vmem:[%s3380_s24 + $0x10] sm:$0xf] %vm975_vm2, %v1475_v4  ;;  %v3530_v4 = vsel %vm752_vm3, %v2977_v27, %v751_v58 }
 0x12d   : > { %v754_v17 = vmul.f32 %v3530_v4, %v737_v1 }
 0x12f   : > { %1476 = vrot.lane.b32.xlu2 %v3389_v30, %s3154_s20  ;;  %v758_v32 = vadd.f32 1.1920929e-07, %v754_v17 }
 0x131   : > { %821 = vadd.xlane.f32.xlu0 %v820_v7  ;;  %2978 = vrsqrt.f32 %v758_v32  ;;  %vm768_vm5 = vweird.f32 %v758_v32 }
 0x133   : > { %v3532_v7 = vpop.permute.xlu0 %1495 }
 0x137   : > { %1497 = vrot.lane.b32.xlu2 %v3442_v45, %s3155_s25  ;;  %v2979_v1 = vpop.eup %2978 }
 0x138   : > { %vm769_vm4 = vweird.f32 %v2979_v1 }
 0x139   : > { %vm770_vm6 = vmor %vm768_vm5, %vm769_vm4 }
 0x13a   : > { %1478 = vrot.lane.b32.xlu1 %v3468_v56, %s3154_s20  ;;  %v763_v56 = vmul.f32 %v2979_v1, %v758_v32 }
 0x13f   : > { %1150 = vrot.lane.b32.xlu2 %v3516_v16, %s3154_s20 }
 0x141   : > { %v743_v25 = vpop.xlane.xlu1 %742 }
 0x142   : > { %v756_v29 = vmul.f32 %v3530_v4, %v743_v25  ;;  %v1072_v25 = vsel %vm734_vm1, %v1061_v0, 0.0 }
 0x144   : > { %v760_v58 = vadd.f32 1.1920929e-07, %v756_v29 }
 0x145   : > { %1480 = vrot.lane.b32.xlu0 %v3477_v60, %s3154_s20  ;;  %v1063_v60 = vpop.permute.xlu0 %1062 }
 0x146   : > { %v1075_v27 = vsel %vm734_vm1, %v1063_v60, 0.0  ;;  %2980 = vrsqrt.f32 %v760_v58  ;;  %vm788_vm8 = vweird.f32 %v760_v58 }
 0x149   : > { %v816_v45 = vpop.xlane.xlu2 %815 }
 0x14a   : > { %v826_v54 = vmul.f32 %v816_v45, %v3530_v4 }
 0x14c   : > { %v830_v34 = vadd.f32 1.1920929e-07, %v826_v54  ;;  %v2981_v26 = vpop.eup %2980 }
 0x14d   : > { %v783_v3 = vmul.f32 %v2981_v26, %v760_v58  ;;  %vm789_vm7 = vweird.f32 %v2981_v26 }
 0x14e   : > { %2982 = vrsqrt.f32 %v830_v34  ;;  %vm790_vm10 = vmor %vm788_vm8, %vm789_vm7  ;;  %vm840_vm11 = vweird.f32 %v830_v34 }
 0x14f   : > { %v784_v41 = vmul.f32 %v2981_v26, %v783_v3 }
 0x151   : > { %v1065_v28 = vpop.permute.xlu2 %1064 }
 0x152   : > { %v1078_v17 = vsel %vm734_vm1, %v1065_v28, 0.0  ;;  %v1156_v28 = vsel %vm734_vm1, %v1145_v35, 0.0 }
 0x154   : > { %v2983_v29 = vpop.eup %2982 }
 0x155   : > { %v835_v54 = vmul.f32 %v2983_v29, %v830_v34  ;;  %vm841_vm9 = vweird.f32 %v2983_v29 }
 0x156   : > { %vm842_vm12 = vmor %vm840_vm11, %vm841_vm9 }
 0x159   : > { %v1147_v30 = vpop.permute.xlu1 %1146 }
 0x161   : > { %v3542_v45 = vpop.permute.xlu1 %1493 }
 0x164   : > { %824 = vadd.xlane.f32.xlu1 %v823_v37  ;;  %v764_v37 = vmul.f32 %v2979_v1, %v763_v56  ;;  %v836_v56 = vmul.f32 %v2983_v29, %v835_v54 }
 0x166   : > { %v740_v60 = vpop.xlane.xlu0 %739  ;;  %v765_v11 = vmul.f32 0.5, %v764_v37 }
 0x167   : > { %v755_v0 = vmul.f32 %v3530_v4, %v740_v60 }
 0x168   : > { %1076 = vadd.xlane.f32.xlu2 %v1075_v27  ;;  %v1159_v27 = vsel %vm734_vm1, %v1147_v30, 0.0  ;;  %v785_v30 = vmul.f32 0.5, %v784_v41 }
 0x169   : > { %v1067_v12 = vpop.permute.xlu1 %1066  ;;  %v759_v37 = vadd.f32 1.1920929e-07, %v755_v0 }
 0x16a   : > { %v1081_v50 = vsel %vm734_vm1, %v1067_v12, 0.0  ;;  %v786_v3 = vsub.f32 1.5, %v785_v30 }
 0x16b   : > { %2984 = vrsqrt.f32 %v759_v37  ;;  %vm778_vm15 = vweird.f32 %v759_v37 }
 0x16c   : > { %1079 = vadd.xlane.f32.xlu1 %v1078_v17  ;;  %v766_v17 = vsub.f32 1.5, %v765_v11  ;;  %v787_v54 = vmul.f32 %v2981_v26, %v786_v3 }
 0x16e   : > { %v767_v2 = vmul.f32 %v2979_v1, %v766_v17  ;;  %v791_v32 = vsel %vm790_vm10, %v2981_v26, %v787_v54 }
 0x16f   : > { %1073 = vadd.xlane.f32.xlu0 %v1072_v25  ;;  %v804_v17 = vmul.f32 0.25, %v791_v32 }
 0x170   : > { %v771_v11 = vsel %vm770_vm6, %v2979_v1, %v767_v2 }
 0x171   : > { %v802_v60 = vmul.f32 0.25, %v771_v11  ;;  %v3560_v34 = vmul.f32 %v804_v17, %v3396_v31 }
 0x173   : > { %v3550_v41 = vmul.f32 %v802_v60, %v3355_v22 }
 0x174   : > { %1160 = vadd.xlane.f32.xlu1 %v1159_v27  ;;  %v837_v27 = vmul.f32 0.5, %v836_v56 }
 0x175   : > { %v942_v58 = vmul.f32 %v3550_v41, %v3286_v10 }
 0x176   : > { %v838_v35 = vsub.f32 1.5, %v837_v27  ;;  %v900_v27 = vmul.f32 %v3460_v52, %v3560_v34 }
 0x177   : > { %1157 = vadd.xlane.f32.xlu0 %v1156_v28 }
 0x178   : > { %v839_v28 = vmul.f32 %v2983_v29, %v838_v35 }
 0x179   : > { %v1149_v25 = vpop.permute.xlu0 %1148 }
 0x17a   : > { %v1162_v63 = vsel %vm734_vm1, %v1149_v25, 0.0  ;;  %v843_v2 = vsel %vm842_vm12, %v2983_v29, %v839_v28 }
 0x17b   : > { %1163 = vadd.xlane.f32.xlu2 %v1162_v63  ;;  %v2985_v63 = vpop.eup %2984  ;;  %v3556_v25 = vmul.f32 %v843_v2, %v3357_v23  ;;  %v944_v2 = vmul.f32 %v3560_v34, %v3280_v9 }
 0x17c   : > { %v773_v12 = vmul.f32 %v2985_v63, %v759_v37  ;;  %vm779_vm13 = vweird.f32 %v2985_v63 }
 0x17d   : > { %v1012_v29 = vmul.f32 %v3556_v25, %v3286_v10  ;;  %vm780_vm0 = vmor %vm778_vm15, %vm779_vm13 }
 0x17e   : > { %v774_v56 = vmul.f32 %v2985_v63, %v773_v12 }
 0x17f   : > { %1082 = vadd.xlane.f32.xlu0 %v1081_v50 }
 0x180   : > { %v775_v30 = vmul.f32 0.5, %v774_v56 }
 0x182   : > { %v776_v54 = vsub.f32 1.5, %v775_v30 }
 0x184   : > { %v777_v12 = vmul.f32 %v2985_v63, %v776_v54 }
 0x18a   : > { %v819_v50 = vpop.xlane.xlu2 %818 }
 0x18b   : > { %v827_v1 = vmul.f32 %v819_v50, %v3530_v4 }
 0x18d   : > { %v831_v0 = vadd.f32 1.1920929e-07, %v827_v1  ;;  %950 = vrot.lane.b32.xlu1 %v942_v58, %s3151_s12  ;;  %v781_v58 = vsel %vm780_vm0, %v2985_v63, %v777_v12  ;;  %vm966_vm0 = vcmask 64512  }
 0x18f   : > { %2986 = vrsqrt.f32 %v831_v0  ;;  %vm850_vm3 = vweird.f32 %v831_v0 }
 0x192   : > { %v1477_v26 = vpop.permute.xlu2 %1476 }
 0x193   : > { %2746 = vst.msk [vmem:[%s3380_s24 + $0x14] sm:$0xf] %vm975_vm2, %v1477_v26  ;;  %1020 = vrot.lane.b32.xlu2 %v1012_v29, %s3151_s12 }
 0x194   : > { %v746_v3 = vpop.xlane.xlu1 %745 }
 0x195   : > { %v2987_v11 = vpop.eup %2986  ;;  %v757_v60 = vmul.f32 %v3530_v4, %v746_v3  ;;  %910 = vrot.lane.b32.xlu1 %v900_v27, %s3157_s27  ;;  %v803_v27 = vmul.f32 0.25, %v781_v58 }
 0x196   : > { %v845_v35 = vmul.f32 %v2987_v11, %v831_v0  ;;  %vm851_vm14 = vweird.f32 %v2987_v11 }
 0x197   : > { %v761_v32 = vadd.f32 1.1920929e-07, %v757_v60  ;;  %vm852_vm4 = vmor %vm850_vm3, %vm851_vm14 }
 0x198   : > { %v846_v28 = vmul.f32 %v2987_v11, %v845_v35 }
 0x199   : > { %2988 = vrsqrt.f32 %v761_v32  ;;  %vm798_vm6 = vweird.f32 %v761_v32 }
 0x19a   : > { %v847_v10 = vmul.f32 0.5, %v846_v28  ;;  %v3571_v50 = vpop.permute.xlu2 %1497 }
 0x19b   : > { %954 = vrot.lane.b32.xlu2 %v944_v2, %s3151_s12 }
 0x19c   : > { %v848_v1 = vsub.f32 1.5, %v847_v10  ;;  %v3588_v10 = vmul.f32 %v803_v27, %v3404_v33 }
 0x19e   : > { %v849_v17 = vmul.f32 %v2987_v11, %v848_v1 }
 0x19f   : > { %v2989_v56 = vpop.eup %2988 }
 0x1a0   : > { %v853_v26 = vsel %vm852_vm4, %v2987_v11, %v849_v17  ;;  %v793_v30 = vmul.f32 %v2989_v56, %v761_v32  ;;  %vm799_vm5 = vweird.f32 %v2989_v56  ;;  %v899_v17 = vmul.f32 %v3414_v36, %v3588_v10 }
 0x1a1   : > { %v3577_v29 = vmul.f32 %v853_v26, %v3420_v39  ;;  %vm800_vm7 = vmor %vm798_vm6, %vm799_vm5 }
 0x1a2   : > { %v1151_v3 = vpop.permute.xlu2 %1150  ;;  %v794_v35 = vmul.f32 %v2989_v56, %v793_v30 }
 0x1a3   : > { %v1165_v60 = vsel %vm734_vm1, %v1151_v3, 0.0  ;;  %v1013_v54 = vmul.f32 %v3577_v29, %v3270_v5  ;;  %v985_v37 = vmul.f32 %v3414_v36, %v3577_v29  ;;  %v984_v36 = vmul.f32 %v3448_v47, %v3556_v25 }
 0x1a4   : > { %1166 = vadd.xlane.f32.xlu0 %v1165_v60  ;;  %v795_v63 = vmul.f32 0.5, %v794_v35  ;;  %v822_v0 = vpop.xlane.xlu0 %821 }
 0x1a5   : > { %1022 = vrot.lane.b32.xlu1 %v1013_v54, %s3151_s12  ;;  %994 = vrot.lane.b32.xlu2 %v985_v37, %s3157_s27  ;;  %v828_v11 = vmul.f32 %v822_v0, %v3530_v4 }
 0x1a6   : > { %v796_v28 = vsub.f32 1.5, %v795_v63 }
 0x1a7   : > { %v832_v2 = vadd.f32 1.1920929e-07, %v828_v11  ;;  %v898_v11 = vmul.f32 %v3448_v47, %v3550_v41 }
 0x1a8   : > { %v797_v12 = vmul.f32 %v2989_v56, %v796_v28 }
 0x1a9   : > { %2990 = vrsqrt.f32 %v832_v2  ;;  %vm860_vm9 = vweird.f32 %v832_v2 }
 0x1aa   : > { %v801_v1 = vsel %vm800_vm7, %v2989_v56, %v797_v12 }
 0x1ab   : > { %v805_v58 = vmul.f32 0.25, %v801_v1 }
 0x1ac   : > { %v1479_v26 = vpop.permute.xlu1 %1478 }
 0x1ad   : > { %908 = vrot.lane.b32.xlu2 %v899_v17, %s3157_s27  ;;  %2747 = vst.msk [vmem:[%s3380_s24 + $0x18] sm:$0xf] %vm975_vm2, %v1479_v26  ;;  %v3596_v30 = vmul.f32 %v805_v58, %v3436_v43 }
 0x1af   : > { %v2991_v27 = vpop.eup %2990  ;;  %v945_v32 = vmul.f32 %v3596_v30, %v3313_v19  ;;  %v901_v12 = vmul.f32 %v3458_v51, %v3596_v30 }
 0x1b0   : > { %v855_v3 = vmul.f32 %v2991_v27, %v832_v2  ;;  %vm861_vm8 = vweird.f32 %v2991_v27  ;;  %v943_v2 = vmul.f32 %v3588_v10, %v3270_v5 }
 0x1b1   : > { %956 = vrot.lane.b32.xlu1 %v945_v32, %s3151_s12  ;;  %vm862_vm10 = vmor %vm860_vm9, %vm861_vm8 }
 0x1b2   : > { %v856_v56 = vmul.f32 %v2991_v27, %v855_v3 }
 0x1b4   : > { %v857_v35 = vmul.f32 0.5, %v856_v56 }
 0x1b6   : > { %v858_v60 = vsub.f32 1.5, %v857_v35 }
 0x1b7   : > { %v1481_v54 = vpop.permute.xlu0 %1480 }
 0x1b8   : > { %992 = vrot.lane.b32.xlu0 %v984_v36, %s3157_s27  ;;  %v859_v37 = vmul.f32 %v2991_v27, %v858_v60  ;;  %2748 = vst.msk [vmem:[%s3380_s24 + $0x1c] sm:$0xf] %vm975_vm2, %v1481_v54 }
 0x1ba   : > { %v863_v63 = vsel %vm862_vm10, %v2991_v27, %v859_v37 }
 0x1bb   : > { %v3607_v0 = vmul.f32 %v863_v63, %v3450_v48 }
 0x1bd   : > { %v986_v28 = vmul.f32 %v3460_v52, %v3607_v0  ;;  %v1014_v47 = vmul.f32 %v3607_v0, %v3280_v9  ;;  %v1503_v9 = vsel %vm734_vm1, %v3528_v59, 0.0 }
 0x1bf   : > { %996 = vrot.lane.b32.xlu1 %v986_v28, %s3157_s27 }
 0x1c0   : > { %906 = vrot.lane.b32.xlu0 %v898_v11, %s3157_s27 }
 0x1c8   : > { %952 = vrot.lane.b32.xlu0 %v943_v2, %s3151_s12  ;;  %v1512_v2 = vsel %vm734_vm1, %v3571_v50, 0.0 }
 0x1d0   : > { %912 = vrot.lane.b32.xlu0 %v901_v12, %s3157_s27 }
 0x1d7   : > { %v825_v1 = vpop.xlane.xlu1 %824 }
 0x1d8   : > { %1024 = vrot.lane.b32.xlu0 %v1014_v47, %s3151_s12  ;;  %v829_v52 = vmul.f32 %v825_v1, %v3530_v4 }
 0x1da   : > { %v833_v17 = vadd.f32 1.1920929e-07, %v829_v52 }
 0x1db   : > { %v1077_v32 = vpop.xlane.xlu2 %1076 }
 0x1dc   : > { %2992 = vrsqrt.f32 %v833_v17  ;;  %v1085_v35 = vmul.f32 %v1077_v32, %v3530_v4  ;;  %vm870_vm12 = vweird.f32 %v833_v17 }
 0x1de   : > { %v1089_v63 = vadd.f32 1.1920929e-07, %v1085_v35 }
 0x1df   : > { %v3625_v58 = vpop.xlane.xlu1 %1079 }
 0x1e0   : > { %vm1108_vm5 = vweird.f32 %v1089_v63 }
 0x1e2   : > { %v2993_v5 = vpop.eup %2992 }
 0x1e3   : > { %v865_v26 = vmul.f32 %v2993_v5, %v833_v17  ;;  %vm871_vm11 = vweird.f32 %v2993_v5 }
 0x1e4   : > { %vm872_vm13 = vmor %vm870_vm12, %vm871_vm11 }
 0x1e5   : > { %v866_v27 = vmul.f32 %v2993_v5, %v865_v26 }
 0x1e7   : > { %v867_v3 = vmul.f32 0.5, %v866_v27  ;;  %v1161_v56 = vpop.xlane.xlu1 %1160 }
 0x1e8   : > { %v1169_v36 = vmul.f32 %v1161_v56, %v3530_v4 }
 0x1e9   : > { %v868_v60 = vsub.f32 1.5, %v867_v3  ;;  %1504 = vadd.xlane.f32.xlu1 %v1503_v9 }
 0x1ea   : > { %v1173_v54 = vadd.f32 1.1920929e-07, %v1169_v36 }
 0x1eb   : > { %v869_v37 = vmul.f32 %v2993_v5, %v868_v60 }
 0x1ec   : > { %2994 = vrsqrt.f32 %v1173_v54  ;;  %vm1192_vm15 = vweird.f32 %v1173_v54 }
 0x1ed   : > { %v873_v11 = vsel %vm872_vm13, %v2993_v5, %v869_v37  ;;  %2996 = vrsqrt.f32 %v1089_v63 }
 0x1ee   : > { %v3632_v28 = vmul.f32 %v873_v11, %v3510_v13  ;;  %v1164_v47 = vpop.xlane.xlu2 %1163  ;;  %v940_v11 = vmul.f32 %v3418_v38, %v3560_v34 }
 0x1ef   : > { %v1170_v50 = vmul.f32 %v1164_v47, %v3530_v4 }
 0x1f0   : > { %v1015_v59 = vmul.f32 %v3632_v28, %v3313_v19  ;;  %v987_v12 = vmul.f32 %v3458_v51, %v3632_v28  ;;  %v1074_v51 = vpop.xlane.xlu0 %1073 }
 0x1f1   : > { %1513 = vadd.xlane.f32.xlu1 %v1512_v2  ;;  %v3647_v56 = vadd.f32 1.1920929e-07, %v1170_v50  ;;  %v880_v2 = vmul.f32 %v3560_v34, %v3301_v14 }
 0x1f2   : > { %v2995_v1 = vpop.eup %2994  ;;  %1026 = vrot.lane.b32.xlu2 %v1015_v59, %s3151_s12  ;;  %998 = vrot.lane.b32.xlu0 %v987_v12, %s3157_s27 }
 0x1f3   : > { %v1187_v52 = vmul.f32 %v2995_v1, %v1173_v54  ;;  %v2997_v17 = vpop.eup %2996  ;;  %2998 = vrsqrt.f32 %v3647_v56  ;;  %vm1193_vm14 = vweird.f32 %v2995_v1  ;;  %vm1202_vm7 = vweird.f32 %v3647_v56 }
 0x1f4   : > { %v1103_v5 = vmul.f32 %v2997_v17, %v1089_v63  ;;  %vm1194_vm3 = vmor %vm1192_vm15, %vm1193_vm14  ;;  %vm1109_vm4 = vweird.f32 %v2997_v17 }
 0x1f5   : > { %v1188_v26 = vmul.f32 %v2995_v1, %v1187_v52  ;;  %vm1110_vm6 = vmor %vm1108_vm5, %vm1109_vm4 }
 0x1f6   : > { %v3642_v27 = vpop.permute.xlu2 %1020  ;;  %v1104_v32 = vmul.f32 %v2997_v17, %v1103_v5 }
 0x1f7   : > { %v1189_v19 = vmul.f32 0.5, %v1188_v26 }
 0x1f8   : > { %v1105_v35 = vmul.f32 0.5, %v1104_v32  ;;  %v1158_v50 = vpop.xlane.xlu0 %1157 }
 0x1f9   : > { %v1190_v36 = vsub.f32 1.5, %v1189_v19  ;;  %v2999_v26 = vpop.eup %2998 }
 0x1fa   : > { %v1106_v9 = vsub.f32 1.5, %v1105_v35  ;;  %v1197_v19 = vmul.f32 %v2999_v26, %v3647_v56  ;;  %vm1203_vm8 = vweird.f32 %v2999_v26 }
 0x1fb   : > { %v1191_v60 = vmul.f32 %v2995_v1, %v1190_v36  ;;  %v1084_v36 = vmul.f32 %v1074_v51, %v3530_v4  ;;  %v981_v51 = vmul.f32 %v3577_v29, %v3306_v15  ;;  %vm1204_vm9 = vmor %vm1202_vm7, %vm1203_vm8 }
 0x1fc   : > { %v1107_v52 = vmul.f32 %v2997_v17, %v1106_v9  ;;  %v1198_v63 = vmul.f32 %v2999_v26, %v1197_v19 }
 0x1fd   : > { %v1195_v5 = vsel %vm1194_vm3, %v2995_v1, %v1191_v60  ;;  %v1168_v1 = vmul.f32 %v1158_v50, %v3530_v4 }
 0x1fe   : > { %v955_v37 = vpop.permute.xlu2 %954  ;;  %v3664_v34 = vmul.f32 %v1195_v5, %v3420_v39  ;;  %v1111_v54 = vsel %vm1110_vm6, %v2997_v17, %v1107_v52 }
 0x1ff   : > { %v3645_v3 = vpop.permute.xlu1 %950  ;;  %v964_v12 = vsub.f32 %v940_v11, %v955_v37  ;;  %v1133_v35 = vmul.f32 0.25, %v1111_v54  ;;  %v3673_v60 = vadd.f32 1.1920929e-07, %v1168_v1  ;;  %v3676_v37 = vadd.f32 1.1920929e-07, %v1084_v36 }
 0x200   : > { %v1402_v9 = vmul.f32 %v3520_v18, %v3664_v34  ;;  %v1509_v1 = vsel %vm734_vm1, %v3532_v7, 0.0 }
 0x201   : > { %v3679_v11 = vmul.f32 %v1133_v35, %v3404_v33  ;;  %3000 = vrsqrt.f32 %v3673_v60  ;;  %v1506_v35 = vsel %vm734_vm1, %v3542_v45, 0.0  ;;  %vm1182_vm11 = vweird.f32 %v3673_v60 }
 0x202   : > { %3002 = vrsqrt.f32 %v3676_v37  ;;  %vm1098_vm14 = vweird.f32 %v3676_v37 }
 0x203   : > { %v1249_v50 = vmul.f32 %v3496_v6, %v3679_v11  ;;  %v1301_v7 = vmul.f32 %v3520_v18, %v3679_v11  ;;  %v1008_v18 = vmul.f32 %v3466_v55, %v3556_v25 }
 0x206   : > { %v995_v17 = vpop.permute.xlu2 %994 }
 0x207   : > { %v911_v59 = vpop.permute.xlu1 %910  ;;  %v1005_v52 = vadd.f32 %v995_v17, %v981_v51  ;;  %v3001_v19 = vpop.eup %3000 }
 0x208   : > { %v920_v47 = vadd.f32 %v911_v59, %v880_v2  ;;  %v1199_v2 = vmul.f32 0.5, %v1198_v63  ;;  %v1009_v59 = vmul.f32 %v3470_v57, %v3577_v29  ;;  %v1177_v63 = vmul.f32 %v3001_v19, %v3673_v60 }
 0x209   : > { %vm1183_vm10 = vweird.f32 %v3001_v19 }
 0x20a   : > { %v969_v32 = vsel %vm966_vm0, %v920_v47, %v964_v12  ;;  %1575 = vrot.lane.b32.xlu1 %v3454_v49, %s3155_s25  ;;  %v1086_v12 = vmul.f32 %v3625_v58, %v3530_v4  ;;  %v1178_v45 = vmul.f32 %v3001_v19, %v1177_v63  ;;  %vm1184_vm13 = vmor %vm1182_vm11, %vm1183_vm10 }
 0x20b   : > { %v973_v14 = vpack.c.bf16 %v969_v32, %v969_v32  ;;  %v1200_v32 = vsub.f32 1.5, %v1199_v2 }
 0x20c   : > { %v3698_v54 = vadd.f32 1.1920929e-07, %v1086_v12 }
 0x20d   : > { %978 = vst.msk [vmem:[%s3658_s10 + $0x8] sm:$0xf] %vm975_vm2, %v973_v14  ;;  %v1083_v14 = vpop.xlane.xlu0 %1082  ;;  %v1201_v36 = vmul.f32 %v2999_v26, %v1200_v32 }
 0x20e   : > { %3004 = vrsqrt.f32 %v3698_v54  ;;  %v1087_v32 = vmul.f32 %v1083_v14, %v3530_v4  ;;  %v878_v14 = vmul.f32 %v3550_v41, %v3327_v20  ;;  %vm1118_vm4 = vweird.f32 %v3698_v54 }
 0x20f   : > { %v1205_v17 = vsel %vm1204_vm9, %v2999_v26, %v1201_v36  ;;  %v980_v26 = vmul.f32 %v3556_v25, %v3327_v20 }
 0x210   : > { %v3736_v25 = vadd.f32 1.1920929e-07, %v1087_v32  ;;  %v909_v32 = vpop.permute.xlu2 %908 }
 0x212   : > { %1411 = vrot.lane.b32.xlu1 %v1402_v9, %s3151_s12  ;;  %v3708_v9 = vpop.eup %3002  ;;  %3006 = vrsqrt.f32 %v3736_v25  ;;  %vm1128_vm7 = vweird.f32 %v3736_v25 }
 0x213   : > { %v1093_v56 = vmul.f32 %v3708_v9, %v3676_v37  ;;  %vm1099_vm12 = vweird.f32 %v3708_v9  ;;  %v879_v37 = vmul.f32 %v3588_v10, %v3306_v15 }
 0x214   : > { %v3717_v51 = vpop.eup %3004  ;;  %vm1100_vm15 = vmor %vm1098_vm14, %vm1099_vm12 }
 0x215   : > { %v1094_v12 = vmul.f32 %v3708_v9, %v1093_v56  ;;  %vm1119_vm3 = vweird.f32 %v3717_v51 }
 0x216   : > { %vm1120_vm5 = vmor %vm1118_vm4, %vm1119_vm3 }
 0x217   : > { %v1023_v47 = vpop.permute.xlu1 %1022  ;;  %v1167_v2 = vpop.xlane.xlu0 %1166 }
 0x218   : > { %v1033_v5 = vsub.f32 %v1009_v59, %v1023_v47  ;;  %v3720_v59 = vmul.f32 %v1205_v17, %v3450_v48  ;;  %v1179_v47 = vmul.f32 0.5, %v1178_v45 }
 0x21a   : > { %v1037_v29 = vsel %vm966_vm0, %v1005_v52, %v1033_v5  ;;  %1258 = vrot.lane.b32.xlu1 %v1249_v50, %s3157_s27  ;;  %v1113_v52 = vmul.f32 %v3717_v51, %v3698_v54  ;;  %v1375_v5 = vmul.f32 %v3502_v8, %v3720_v59  ;;  %v1095_v50 = vmul.f32 0.5, %v1094_v12 }
 0x21b   : > { %v1041_v58 = vpack.c.bf16 %v1037_v29, %v1037_v29  ;;  %1510 = vadd.xlane.f32.xlu2 %v1509_v1  ;;  %v1032_v1 = vsub.f32 %v1008_v18, %v3642_v27  ;;  %v938_v27 = vmul.f32 %v3466_v55, %v3550_v41  ;;  %v1171_v55 = vmul.f32 %v1167_v2, %v3530_v4 }
 0x21c   : > { %1507 = vadd.xlane.f32.xlu0 %v1506_v35  ;;  %v1114_v36 = vmul.f32 %v3717_v51, %v1113_v52 }
 0x21d   : > { %1045 = vst.msk [vmem:[%s3695_s14 + $0x4] sm:$0xf] %vm975_vm2, %v1041_v58  ;;  %v1180_v58 = vsub.f32 1.5, %v1179_v47  ;;  %v962_v60 = vsub.f32 %v938_v27, %v3645_v3  ;;  %v3760_v3 = vadd.f32 1.1920929e-07, %v1171_v55 }
 0x21e   : > { %v1115_v45 = vmul.f32 0.5, %v1114_v36  ;;  %v919_v36 = vadd.f32 %v909_v32, %v879_v37  ;;  %v1010_v37 = vmul.f32 %v3418_v38, %v3607_v0 }
 0x21f   : > { %v1181_v17 = vmul.f32 %v3001_v19, %v1180_v58  ;;  %3008 = vrsqrt.f32 %v3760_v3  ;;  %vm1212_vm10 = vweird.f32 %v3760_v3 }
 0x221   : > { %v1185_v52 = vsel %vm1184_vm13, %v3001_v19, %v1181_v17 }
 0x222   : > { %1310 = vrot.lane.b32.xlu1 %v1301_v7, %s3151_s12  ;;  %v1096_v7 = vsub.f32 1.5, %v1095_v50  ;;  %v3757_v41 = vmul.f32 %v1185_v52, %v3357_v23  ;;  %v3762_v50 = vpop.eup %3006 }
 0x223   : > { %vm1129_vm6 = vweird.f32 %v3762_v50 }
 0x224   : > { %v1097_v12 = vmul.f32 %v3708_v9, %v1096_v7  ;;  %v1373_v17 = vmul.f32 %v3434_v42, %v3757_v41  ;;  %vm1130_vm8 = vmor %vm1128_vm7, %vm1129_vm6 }
 0x225   : > { %v3009_v27 = vpop.eup %3008 }
 0x226   : > { %v1101_v19 = vsel %vm1100_vm15, %v3708_v9, %v1097_v12  ;;  %v939_v9 = vmul.f32 %v3470_v57, %v3588_v10  ;;  %vm1213_vm9 = vweird.f32 %v3009_v27 }
 0x227   : > { %vm1214_vm11 = vmor %vm1212_vm10, %vm1213_vm9 }
 0x22a   : > { %v993_v29 = vpop.permute.xlu0 %992  ;;  %1385 = vrot.lane.b32.xlu1 %v1375_v5, %s3157_s27 }
 0x22b   : > { %v1004_v35 = vadd.f32 %v993_v29, %v980_v26  ;;  %v1116_v26 = vsub.f32 1.5, %v1115_v45  ;;  %v1132_v29 = vmul.f32 0.25, %v1101_v19  ;;  %v957_v45 = vpop.permute.xlu1 %956 }
 0x22d   : > { %v1036_v63 = vsel %vm966_vm0, %v1004_v35, %v1032_v1  ;;  %v1117_v2 = vmul.f32 %v3717_v51, %v1116_v26  ;;  %v1401_v1 = vmul.f32 %v3464_v53, %v3757_v41  ;;  %v1123_v35 = vmul.f32 %v3762_v50, %v3736_v25 }
 0x22e   : > { %v1040_v56 = vpack.c.bf16 %v1036_v63, %v1036_v63  ;;  %v3784_v54 = vmul.f32 %v1132_v29, %v3355_v22  ;;  %v1207_v26 = vmul.f32 %v3009_v27, %v3760_v3 }
 0x22f   : > { %v1121_v63 = vsel %vm1120_vm5, %v3717_v51, %v1117_v2  ;;  %v941_v51 = vmul.f32 %v3481_v62, %v3596_v30 }
 0x230   : > { %1044 = vst.msk [vmem:[%s3695_s14] sm:$0xf] %vm975_vm2, %v1040_v56  ;;  %1571 = vrot.lane.b32.xlu0 %v3361_v24, %s3155_s25  ;;  %v1134_v7 = vmul.f32 0.25, %v1121_v63  ;;  %v1124_v56 = vmul.f32 %v3762_v50, %v1123_v35 }
 0x232   : > { %v907_v47 = vpop.permute.xlu0 %906  ;;  %v1125_v52 = vmul.f32 0.5, %v1124_v56 }
 0x233   : > { %v918_v18 = vadd.f32 %v907_v47, %v878_v14  ;;  %1573 = vrot.lane.b32.xlu2 %v3424_v40, %s3155_s25  ;;  %v881_v14 = vmul.f32 %v3596_v30, %v3336_v21  ;;  %v1248_v47 = vmul.f32 %v3434_v42, %v3784_v54  ;;  %v1208_v30 = vmul.f32 %v3009_v27, %v1207_v26  ;;  %v997_v2 = vpop.permute.xlu1 %996  ;;  %v3811_v42 = vld [vmem:[%s4516_s4 + $0x10] sm:$0xff] }
 0x234   : > { %v1126_v19 = vsub.f32 1.5, %v1125_v52  ;;  %v982_v32 = vmul.f32 %v3811_v42, %v3607_v0 }
 0x235   : > { %v967_v20 = vsel %vm966_vm0, %v918_v18, %v962_v60  ;;  %v965_v60 = vsub.f32 %v941_v51, %v957_v45  ;;  %v3799_v18 = vmul.f32 %v1134_v7, %v3396_v31  ;;  %v1209_v35 = vmul.f32 0.5, %v1208_v30  ;;  %v4560_v30 = vld [vmem:[#allocation19_spill] sm:$0xff] }
 0x236   : > { %v971_v5 = vpack.c.bf16 %v967_v20, %v967_v20  ;;  %v1127_v29 = vmul.f32 %v3762_v50, %v1126_v19  ;;  %v1011_v45 = vmul.f32 %v3481_v62, %v3632_v28 }
 0x237   : > { %v1250_v21 = vmul.f32 %v3502_v8, %v3799_v18  ;;  %v1300_v8 = vmul.f32 %v3464_v53, %v3784_v54  ;;  %v1302_v53 = vmul.f32 %v3526_v44, %v3799_v18 }
 0x238   : > { %976 = vst.msk [vmem:[%s3658_s10] sm:$0xf] %vm975_vm2, %v971_v5  ;;  %1577 = vrot.lane.b32.xlu0 %v3516_v16, %s3155_s25  ;;  %v1131_v0 = vsel %vm1130_vm8, %v3762_v50, %v1127_v29  ;;  %v1403_v50 = vmul.f32 %v3526_v44, %v3720_v59 }
 0x239   : > { %v1135_v63 = vmul.f32 0.25, %v1131_v0 }
 0x23a   : > { %v953_v58 = vpop.permute.xlu0 %952 }
 0x23b   : > { %v963_v15 = vsub.f32 %v939_v9, %v953_v58  ;;  %1409 = vrot.lane.b32.xlu2 %v1401_v1, %s3151_s12  ;;  %v1006_v58 = vadd.f32 %v997_v2, %v982_v32  ;;  %v3836_v25 = vmul.f32 %v1135_v63, %v3436_v43 }
 0x23d   : > { %v968_v57 = vsel %vm966_vm0, %v919_v36, %v963_v15  ;;  %v1210_v15 = vsub.f32 1.5, %v1209_v35  ;;  %v1251_v56 = vmul.f32 %v3446_v46, %v3836_v25  ;;  %v1303_v44 = vmul.f32 %v3479_v61, %v3836_v25 }
 0x23e   : > { %v972_v10 = vpack.c.bf16 %v968_v57, %v968_v57  ;;  %v1374_v57 = vmul.f32 %v3496_v6, %v3664_v34 }
 0x240   : > { %977 = vst.msk [vmem:[%s3658_s10 + $0x4] sm:$0xf] %vm975_vm2, %v972_v10  ;;  %1381 = vrot.lane.b32.xlu0 %v1373_v17, %s3157_s27  ;;  %v1211_v10 = vmul.f32 %v3009_v27, %v1210_v15  ;;  %v3898_v15 = vld [vmem:[%s4517_s5 + $0x10] sm:$0xff] }
 0x242   : > { %v913_v12 = vpop.permute.xlu0 %912  ;;  %v1215_v7 = vsel %vm1214_vm11, %v3009_v27, %v1211_v10  ;;  %v3858_v27 = vld [vmem:[%s4516_s4 + $0x18] sm:$0xff] }
 0x243   : > { %v921_v55 = vadd.f32 %v913_v12, %v881_v14  ;;  %1256 = vrot.lane.b32.xlu2 %v1248_v47, %s3157_s27  ;;  %v3844_v6 = vmul.f32 %v1215_v7, %v3510_v13  ;;  %v983_v51 = vmul.f32 %v3858_v27, %v3632_v28 }
 0x245   : > { %v970_v20 = vsel %vm966_vm0, %v921_v55, %v965_v60  ;;  %v1376_v3 = vmul.f32 %v3446_v46, %v3844_v6  ;;  %v1404_v60 = vmul.f32 %v3479_v61, %v3844_v6  ;;  %v1233_v61 = vmul.f32 %v4560_v30, %v3679_v11 }
 0x246   : > { %v974_v5 = vpack.c.bf16 %v970_v20, %v970_v20  ;;  %v4559_v20 = vld [vmem:[#allocation15_spill] sm:$0xff] }
 0x248   : > { %979 = vst.msk [vmem:[%s3658_s10 + $0xc] sm:$0xf] %vm975_vm2, %v974_v5  ;;  %1260 = vrot.lane.b32.xlu0 %v1250_v21, %s3157_s27  ;;  %v1398_v5 = vmul.f32 %v4559_v20, %v3664_v34 }
 0x24a   : > { %v1025_v9 = vpop.permute.xlu0 %1024 }
 0x24b   : > { %v1034_v1 = vsub.f32 %v1010_v37, %v1025_v9  ;;  %1308 = vrot.lane.b32.xlu2 %v1300_v8, %s3151_s12  ;;  %v1285_v9 = vmul.f32 %v4559_v20, %v3679_v11 }
 0x24c   : > { %v1027_v17 = vpop.permute.xlu2 %1026 }
 0x24d   : > { %v1038_v36 = vsel %vm966_vm0, %v1006_v58, %v1034_v1  ;;  %v1035_v14 = vsub.f32 %v1011_v45, %v1027_v17  ;;  %v3886_v1 = vld [vmem:[%s4516_s4 + $0x8] sm:$0xff] }
 0x24e   : > { %v1042_v38 = vpack.c.bf16 %v1038_v36, %v1038_v36 }
 0x250   : > { %1046 = vst.msk [vmem:[%s3695_s14 + $0x8] sm:$0xf] %vm975_vm2, %v1042_v38  ;;  %1312 = vrot.lane.b32.xlu0 %v1302_v53, %s3151_s12  ;;  %v4561_v38 = vld [vmem:[#allocation22_spill] sm:$0xff] }
 0x251   : > { %v1397_v11 = vmul.f32 %v4561_v38, %v3757_v41 }
 0x253   : > { %1383 = vrot.lane.b32.xlu2 %v1374_v57, %s3157_s27 }
 0x258   : > { %1413 = vrot.lane.b32.xlu0 %v1403_v50, %s3151_s12  ;;  %v4562_v50 = vld [vmem:[#allocation18_spill] sm:$0xff] }
 0x259   : > { %v1232_v7 = vmul.f32 %v4562_v50, %v3784_v54 }
 0x25b   : > { %1262 = vrot.lane.b32.xlu2 %v1251_v56, %s3157_s27 }
 0x25c   : > { %v3865_v62 = vpop.xlane.xlu1 %1504 }
 0x260   : > { %1387 = vrot.lane.b32.xlu0 %v1376_v3, %s3157_s27 }
 0x263   : > { %1314 = vrot.lane.b32.xlu2 %v1303_v44, %s3151_s12 }
 0x264   : > { %v999_v46 = vpop.permute.xlu0 %998  ;;  %v3870_v55 = vpop.xlane.xlu1 %1513 }
 0x265   : > { %v1007_v12 = vadd.f32 %v999_v46, %v983_v51  ;;  %v3915_v51 = vld [vmem:[%s4516_s4] sm:$0xff]  ;;  %v1284_v46 = vmul.f32 %v4561_v38, %v3784_v54 }
 0x267   : > { %v1039_v47 = vsel %vm966_vm0, %v1007_v12, %v1035_v14 }
 0x268   : > { %v1043_v52 = vpack.c.bf16 %v1039_v47, %v1039_v47 }
 0x26a   : > { %1047 = vst.msk [vmem:[%s3695_s14 + $0xc] sm:$0xf] %vm975_vm2, %v1043_v52  ;;  %v1369_v52 = vmul.f32 %v4562_v50, %v3757_v41  ;;  %v3938_v41 = vld [vmem:[%s4517_s5] sm:$0xff] }
 0x26b   : > { %1415 = vrot.lane.b32.xlu2 %v1404_v60, %s3151_s12 }
 0x27c   : > { %v1576_v26 = vpop.permute.xlu1 %1575 }
 0x27d   : > { %v1589_v28 = vsel %vm734_vm1, %v1576_v26, 0.0 }
 0x27e   : > { %1590 = vadd.xlane.f32.xlu1 %v1589_v28  ;;  %v1370_v28 = vmul.f32 %v4560_v30, %v3664_v34  ;;  %v4564_v34 = vld [vmem:[#allocation20_spill] sm:$0xff] }
 0x27f   : > { %v1235_v30 = vmul.f32 %v4564_v34, %v3836_v25 }
 0x284   : > { %v1412_v19 = vpop.permute.xlu1 %1411 }
 0x285   : > { %v1422_v21 = vsub.f32 %v1398_v5, %v1412_v19 }
 0x28c   : > { %v1259_v2 = vpop.permute.xlu1 %1258 }
 0x28d   : > { %v3877_v32 = vadd.f32 %v1259_v2, %v1233_v61 }
 0x28e   : > { %v3879_v37 = vpop.xlane.xlu2 %1510 }
 0x28f   : > { %v3891_v36 = vpop.xlane.xlu0 %1507 }
 0x294   : > { %v1311_v8 = vpop.permute.xlu1 %1310 }
 0x295   : > { %v1321_v29 = vsub.f32 %v1285_v9, %v1311_v8 }
 0x296   : > { %v1574_v58 = vpop.permute.xlu2 %1573 }
 0x297   : > { %1649 = vrot.lane.b32.xlu1 %v3886_v1, %s3158_s22  ;;  %v1586_v35 = vsel %vm734_vm1, %v1574_v58, 0.0  ;;  %v4565_v58 = vld [vmem:[#allocation21_spill] sm:$0xff] }
 0x298   : > { %1587 = vadd.xlane.f32.xlu0 %v1586_v35  ;;  %v1286_v35 = vmul.f32 %v4565_v58, %v3799_v18 }
 0x29e   : > { %v1410_v0 = vpop.permute.xlu2 %1409 }
 0x29f   : > { %v1421_v53 = vsub.f32 %v1397_v11, %v1410_v0  ;;  %1667 = vrot.lane.b32.xlu1 %v3898_v15, %s3159_s30  ;;  %v3957_v0 = vld [vmem:[%s4517_s5 + $0x18] sm:$0xff] }
 0x2a1   : > { %v3902_v63 = vpack.i.bf16 %v1422_v21, %v1421_v53  ;;  %v4563_v21 = vld [vmem:[#allocation13_spill] sm:$0xff]  ;;  %v4566_v53 = vld [vmem:[#allocation23_spill] sm:$0xff] }
 0x2a2   : > { %v1572_v57 = vpop.permute.xlu0 %1571  ;;  %v1234_v61 = vmul.f32 %v4563_v21, %v3799_v18  ;;  %v1399_v18 = vmul.f32 %v4565_v58, %v3720_v59 }
 0x2a3   : > { %v1583_v10 = vsel %vm734_vm1, %v1572_v57, 0.0  ;;  %v1287_v57 = vmul.f32 %v4566_v53, %v3836_v25  ;;  %v1400_v25 = vmul.f32 %v4566_v53, %v3844_v6  ;;  %v1516_v53 = vmul.f32 %v3891_v36, %v3530_v4 }
 0x2a4   : > { %1584 = vadd.xlane.f32.xlu2 %v1583_v10 }
 0x2a6   : > { %v1257_v56 = vpop.permute.xlu2 %1256 }
 0x2a7   : > { %v3907_v3 = vadd.f32 %v1257_v56, %v1232_v7 }
 0x2a9   : > { %v2866_v44 = vpack.i.bf16 %v3877_v32, %v3907_v3 }
 0x2aa   : > { %v1578_v17 = vpop.permute.xlu0 %1577 }
 0x2ab   : > { %v1592_v45 = vsel %vm734_vm1, %v1578_v17, 0.0 }
 0x2ac   : > { %1647 = vrot.lane.b32.xlu0 %v3915_v51, %s3158_s22  ;;  %1593 = vadd.xlane.f32.xlu2 %v1592_v45  ;;  %v3972_v45 = vld [vmem:[%s4517_s5 + $0x8] sm:$0xff] }
 0x2ae   : > { %v1309_v14 = vpop.permute.xlu2 %1308 }
 0x2af   : > { %v1320_v12 = vsub.f32 %v1284_v46, %v1309_v14 }
 0x2b1   : > { %v3921_v47 = vpack.i.bf16 %v1321_v29, %v1320_v12  ;;  %v1386_v12 = vpop.permute.xlu1 %1385 }
 0x2b2   : > { %v1382_v60 = vpop.permute.xlu0 %1381 }
 0x2b3   : > { %v3925_v26 = vadd.f32 %v1382_v60, %v1369_v52  ;;  %v1371_v52 = vmul.f32 %v4563_v21, %v3720_v59 }
 0x2b4   : > { %1653 = vrot.lane.b32.xlu0 %v3858_v27, %s3158_s22 }
 0x2b6   : > { %v1384_v20 = vpop.permute.xlu2 %1383 }
 0x2b7   : > { %v3931_v5 = vadd.f32 %v1384_v20, %v1370_v28  ;;  %v1372_v28 = vmul.f32 %v4564_v34, %v3844_v6  ;;  %v1515_v6 = vmul.f32 %v3865_v62, %v3530_v4 }
 0x2b9   : > { %v2856_v54 = vpack.i.bf16 %v3931_v5, %v3925_v26 }
 0x2ba   : > { %v1261_v19 = vpop.permute.xlu0 %1260 }
 0x2bb   : > { %v3946_v9 = vadd.f32 %v1261_v19, %v1234_v61  ;;  %v3984_v19 = vadd.f32 %v1386_v12, %v1371_v52 }
 0x2bc   : > { %1663 = vrot.lane.b32.xlu0 %v3938_v41, %s3159_s30 }
 0x2be   : > { %v1263_v2 = vpop.permute.xlu2 %1262 }
 0x2bf   : > { %v3948_v8 = vadd.f32 %v1263_v2, %v1235_v30  ;;  %v1517_v2 = vmul.f32 %v3879_v37, %v3530_v4  ;;  %v1518_v37 = vmul.f32 %v3870_v55, %v3530_v4 }
 0x2c1   : > { %v2876_v29 = vpack.i.bf16 %v3948_v8, %v3946_v9  ;;  %v1521_v58 = vadd.f32 1.1920929e-07, %v1517_v2 }
 0x2c2   : > { %v1313_v38 = vpop.permute.xlu0 %1312 }
 0x2c3   : > { %v1322_v11 = vsub.f32 %v1286_v35, %v1313_v38  ;;  %3010 = vrsqrt.f32 %v1521_v58  ;;  %vm1549_vm13 = vweird.f32 %v1521_v58 }
 0x2c4   : > { %1669 = vrot.lane.b32.xlu0 %v3957_v0, %s3159_s30  ;;  %1651 = vrot.lane.b32.xlu2 %v3811_v42, %s3158_s22 }
 0x2c6   : > { %v1315_v10 = vpop.permute.xlu2 %1314 }
 0x2c7   : > { %v1323_v50 = vsub.f32 %v1287_v57, %v1315_v10  ;;  %v1519_v57 = vadd.f32 1.1920929e-07, %v1515_v6 }
 0x2c9   : > { %v3965_v7 = vpack.i.bf16 %v1323_v50, %v1322_v11  ;;  %v3011_v35 = vpop.eup %3010  ;;  %v1520_v50 = vadd.f32 1.1920929e-07, %v1516_v53  ;;  %3012 = vrsqrt.f32 %v1519_v57  ;;  %vm1529_vm4 = vweird.f32 %v1519_v57 }
 0x2ca   : > { %v1414_v56 = vpop.permute.xlu0 %1413  ;;  %v1544_v59 = vmul.f32 %v3011_v35, %v1521_v58  ;;  %vm1550_vm12 = vweird.f32 %v3011_v35 }
 0x2cb   : > { %v1423_v17 = vsub.f32 %v1399_v18, %v1414_v56  ;;  %vm1551_vm14 = vmor %vm1549_vm13, %vm1550_vm12  ;;  %3014 = vrsqrt.f32 %v1520_v50  ;;  %vm1539_vm6 = vweird.f32 %v1520_v50 }
 0x2cc   : > { %1665 = vrot.lane.b32.xlu2 %v3972_v45, %s3159_s30  ;;  %v1545_v21 = vmul.f32 %v3011_v35, %v1544_v59 }
 0x2ce   : > { %v1416_v46 = vpop.permute.xlu2 %1415  ;;  %v1546_v38 = vmul.f32 0.5, %v1545_v21 }
 0x2cf   : > { %v1424_v14 = vsub.f32 %v1400_v25, %v1416_v46  ;;  %v3013_v25 = vpop.eup %3012 }
 0x2d0   : > { %v1547_v34 = vsub.f32 1.5, %v1546_v38  ;;  %v1524_v12 = vmul.f32 %v3013_v25, %v1519_v57  ;;  %vm1530_vm15 = vweird.f32 %v3013_v25 }
 0x2d1   : > { %v3980_v60 = vpack.i.bf16 %v1424_v14, %v1423_v17  ;;  %v1522_v17 = vadd.f32 1.1920929e-07, %v1518_v37  ;;  %v3015_v46 = vpop.eup %3014  ;;  %vm1531_vm5 = vmor %vm1529_vm4, %vm1530_vm15 }
 0x2d2   : > { %v1388_v20 = vpop.permute.xlu0 %1387  ;;  %v1548_v10 = vmul.f32 %v3011_v35, %v1547_v34  ;;  %v1525_v55 = vmul.f32 %v3013_v25, %v1524_v12  ;;  %vm1540_vm3 = vweird.f32 %v3015_v46 }
 0x2d3   : > { %v3986_v61 = vadd.f32 %v1388_v20, %v1372_v28  ;;  %3016 = vrsqrt.f32 %v1522_v17  ;;  %v1534_v28 = vmul.f32 %v3015_v46, %v1520_v50  ;;  %vm1541_vm7 = vmor %vm1539_vm6, %vm1540_vm3  ;;  %vm1559_vm9 = vweird.f32 %v1522_v17 }
 0x2d4   : > { %v1552_v18 = vsel %vm1551_vm14, %v3011_v35, %v1548_v10  ;;  %v1526_v59 = vmul.f32 0.5, %v1525_v55 }
 0x2d5   : > { %v2886_v30 = vpack.i.bf16 %v3986_v61, %v3984_v19  ;;  %v1565_v62 = vmul.f32 0.25, %v1552_v18  ;;  %v1535_v58 = vmul.f32 %v3015_v46, %v1534_v28 }
 0x2d6   : > { %v1527_v6 = vsub.f32 1.5, %v1526_v59 }
 0x2d7   : > { %v4003_v36 = vmul.f32 %v1565_v62, %v3396_v31  ;;  %v1536_v38 = vmul.f32 0.5, %v1535_v58 }
 0x2d8   : > { %v1528_v18 = vmul.f32 %v3013_v25, %v1527_v6 }
 0x2d9   : > { %v3017_v2 = vpop.eup %3016  ;;  %v1537_v10 = vsub.f32 1.5, %v1536_v38 }
 0x2da   : > { %v1554_v21 = vmul.f32 %v3017_v2, %v1522_v17  ;;  %vm1560_vm8 = vweird.f32 %v3017_v2 }
 0x2db   : > { %v1538_v12 = vmul.f32 %v3015_v46, %v1537_v10  ;;  %vm1561_vm10 = vmor %vm1559_vm9, %vm1560_vm8 }
 0x2dc   : > { %v1555_v34 = vmul.f32 %v3017_v2, %v1554_v21 }
 0x2dd   : > { %v1542_v58 = vsel %vm1541_vm7, %v3015_v46, %v1538_v12 }
 0x2de   : > { %v1556_v62 = vmul.f32 0.5, %v1555_v34  ;;  %v1564_v6 = vmul.f32 0.25, %v1542_v58 }
 0x2e0   : > { %v1557_v28 = vsub.f32 1.5, %v1556_v62 }
 0x2e2   : > { %v1558_v38 = vmul.f32 %v3017_v2, %v1557_v28 }
 0x2e4   : > { %v1562_v50 = vsel %vm1561_vm10, %v3017_v2, %v1558_v38 }
 0x2f1   : > { %v3994_v11 = vpop.xlane.xlu1 %1590 }
 0x309   : > { %v4000_v56 = vpop.permute.xlu1 %1649 }
 0x30b   : > { %v4010_v20 = vpop.xlane.xlu0 %1587 }
 0x311   : > { %v4005_v14 = vpop.permute.xlu1 %1667 }
 0x312   : > { %v1677_v52 = vmul.f32 %v4005_v14, %v4003_v36 }
 0x314   : > { %1687 = vrot.lane.b32.xlu0 %v1677_v52, %s3157_s27  ;;  %v1532_v52 = vsel %vm1531_vm5, %v3013_v25, %v1528_v18  ;;  %v4032_v25 = vmul.f32 %v1564_v6, %v3404_v33  ;;  %v1566_v18 = vmul.f32 0.25, %v1562_v50 }
 0x315   : > { %v1563_v21 = vmul.f32 0.25, %v1532_v52 }
 0x316   : > { %v4049_v2 = vmul.f32 %v1566_v18, %v3436_v43 }
 0x317   : > { %v4012_v35 = vpop.xlane.xlu2 %1584  ;;  %v4029_v57 = vmul.f32 %v1563_v21, %v3355_v22 }
 0x31c   : > { %1701 = vrot.lane.b32.xlu0 %v3886_v1, %s3159_s30 }
 0x31e   : > { %v4016_v53 = vpop.permute.xlu0 %1647 }
 0x31f   : > { %v4018_v37 = vpop.xlane.xlu2 %1593  ;;  %v1659_v52 = vmul.f32 %v4016_v53, %v4029_v57 }
 0x324   : > { %1715 = vrot.lane.b32.xlu0 %v3938_v41, %s3158_s22 }
 0x326   : > { %v4022_v55 = vpop.permute.xlu0 %1653 }
 0x327   : > { %v4024_v59 = vpop.permute.xlu2 %1651 }
 0x32c   : > { %1721 = vrot.lane.b32.xlu0 %v3957_v0, %s3158_s22 }
 0x32e   : > { %v4034_v34 = vpop.permute.xlu0 %1663 }
 0x32f   : > { %v1675_v46 = vmul.f32 %v4034_v34, %v4029_v57  ;;  %v4038_v10 = vpop.permute.xlu2 %1665 }
 0x330   : > { %v1676_v17 = vmul.f32 %v4038_v10, %v4032_v25 }
 0x331   : > { %1683 = vrot.lane.b32.xlu2 %v1675_v46, %s3157_s27 }
 0x332   : > { %1685 = vrot.lane.b32.xlu1 %v1676_v17, %s3157_s27  ;;  %v1595_v17 = vmul.f32 %v4012_v35, %v3530_v4 }
 0x334   : > { %2877 = vrot.lane.b32.xlu0 %v2876_v29, %s3154_s20 }
 0x336   : > { %v4051_v62 = vpop.permute.xlu0 %1669 }
 0x337   : > { %v1678_v12 = vmul.f32 %v4051_v62, %v4049_v2 }
 0x339   : > { %1689 = vrot.lane.b32.xlu2 %v1678_v12, %s3157_s27 }
 0x33a   : > { %1699 = vrot.lane.b32.xlu1 %v3915_v51, %s3159_s30 }
 0x33c   : > { %2887 = vrot.lane.b32.xlu0 %v2886_v30, %s3154_s20  ;;  %v1660_v30 = vmul.f32 %v4000_v56, %v4032_v25 }
 0x341   : > { %1703 = vrot.lane.b32.xlu2 %v3811_v42, %s3159_s30  ;;  %v1661_v42 = vmul.f32 %v4024_v59, %v4003_v36 }
 0x342   : > { %1705 = vrot.lane.b32.xlu1 %v3858_v27, %s3159_s30 }
 0x349   : > { %2862 = vrot.lane.b32.xlu2 %v3902_v63, %s3154_s20 }
 0x34a   : > { %2857 = vrot.lane.b32.xlu1 %v2856_v54, %s3154_s20 }
 0x351   : > { %2872 = vrot.lane.b32.xlu2 %v3921_v47, %s3154_s20  ;;  %v1662_v47 = vmul.f32 %v4022_v55, %v4049_v2 }
 0x352   : > { %2867 = vrot.lane.b32.xlu1 %v2866_v44, %s3154_s20 }
 0x359   : > { %1717 = vrot.lane.b32.xlu2 %v3972_v45, %s3158_s22 }
 0x35a   : > { %1719 = vrot.lane.b32.xlu1 %v3898_v15, %s3158_s22  ;;  %s3162_s22 = smov 56  }
 0x386   : > { %v1688_v63 = vpop.permute.xlu0 %1687 }
 0x387   : > { %v4084_v26 = vadd.f32 %v1688_v63, %v1661_v42  ;;  %v1599_v63 = vadd.f32 1.1920929e-07, %v1595_v17 }
 0x389   : > { %3018 = vrsqrt.f32 %v1599_v63  ;;  %vm1609_vm12 = vweird.f32 %v1599_v63 }
 0x38b   : > { %v1684_v5 = vpop.permute.xlu2 %1683 }
 0x38c   : > { %v1695_v21 = vadd.f32 %v1684_v5, %v1659_v52  ;;  %v1598_v5 = vmul.f32 %v4018_v37, %v3530_v4 }
 0x38e   : > { %v4086_v54 = vpop.permute.xlu0 %1701 }
 0x38f   : > { %v3019_v52 = vpop.eup %3018 }
 0x390   : > { %v1604_v37 = vmul.f32 %v3019_v52, %v1599_v63  ;;  %vm1610_vm11 = vweird.f32 %v3019_v52 }
 0x391   : > { %vm1611_vm13 = vmor %vm1609_vm12, %vm1610_vm11 }
 0x393   : > { %v1690_v32 = vpop.permute.xlu2 %1689 }
 0x394   : > { %v4090_v3 = vadd.f32 %v1690_v32, %v1662_v47  ;;  %v1602_v47 = vadd.f32 1.1920929e-07, %v1598_v5 }
 0x396   : > { %v4094_v9 = vpop.permute.xlu0 %1715  ;;  %3020 = vrsqrt.f32 %v1602_v47  ;;  %vm1639_vm15 = vweird.f32 %v1602_v47 }
 0x397   : > { %v1727_v8 = vmul.f32 %v4094_v9, %v4029_v57 }
 0x399   : > { %1735 = vrot.lane.b32.xlu2 %v1727_v8, %s3151_s12 }
 0x39b   : > { %v4099_v29 = vpop.permute.xlu2 %1703 }
 0x39e   : > { %v4101_v19 = vpop.permute.xlu0 %1721 }
 0x39f   : > { %v1730_v61 = vmul.f32 %v4101_v19, %v4049_v2 }
 0x3a1   : > { %1741 = vrot.lane.b32.xlu2 %v1730_v61, %s3151_s12 }
 0x3a3   : > { %v2863_v28 = vpop.permute.xlu2 %2862 }
 0x3a4   : > { %v1686_v58 = vpop.permute.xlu1 %1685  ;;  %v2865_v8 = vunpack.i.h.bf16 %v2863_v28  ;;  %v2864_v35 = vunpack.i.l.bf16 %v2863_v28 }
 0x3a5   : > { %v1696_v38 = vadd.f32 %v1686_v58, %v1660_v30 }
 0x3a7   : > { %v2896_v6 = vpack.i.bf16 %v1696_v38, %v1695_v21 }
 0x3ab   : > { %v2873_v50 = vpop.permute.xlu2 %2872 }
 0x3ac   : > { %v4110_v46 = vpop.permute.xlu1 %1699  ;;  %v2875_v5 = vunpack.i.h.bf16 %v2873_v50 }
 0x3b3   : > { %v4114_v18 = vpop.permute.xlu2 %1717 }
 0x3b4   : > { %v1728_v12 = vmul.f32 %v4114_v18, %v4032_v25  ;;  %v4118_v42 = vpop.permute.xlu1 %1705 }
 0x3b6   : > { %1737 = vrot.lane.b32.xlu1 %v1728_v12, %s3151_s12  ;;  %v1597_v12 = vmul.f32 %v3994_v11, %v3530_v4 }
 0x3bc   : > { %v2858_v32 = vpop.permute.xlu1 %2857 }
 0x3bd   : > { %v2860_v61 = vunpack.i.h.bf16 %v2858_v32  ;;  %v2859_v30 = vunpack.i.l.bf16 %v2858_v32 }
 0x3be   : > { %2882 = vrot.lane.b32.xlu1 %v3965_v7, %s3154_s20  ;;  %v2874_v7 = vunpack.i.l.bf16 %v2873_v50 }
 0x3bf   : > { %v1457_v58 = vsel %vm966_vm0, %v2859_v30, %v2864_v35  ;;  %v1458_v21 = vsel %vm966_vm0, %v2860_v61, %v2865_v8  ;;  %v1605_v30 = vmul.f32 %v3019_v52, %v1604_v37  ;;  %v3021_v8 = vpop.eup %3020  ;;  %v1601_v61 = vadd.f32 1.1920929e-07, %v1597_v12 }
 0x3c0   : > { %v1461_v38 = vpack.c.bf16 %v1457_v58, %v1457_v58  ;;  %v1462_v17 = vpack.c.bf16 %v1458_v21, %v1458_v21  ;;  %v1634_v44 = vmul.f32 %v3021_v8, %v1602_v47  ;;  %vm1640_vm14 = vweird.f32 %v3021_v8 }
 0x3c1   : > { %3022 = vrsqrt.f32 %v1601_v61  ;;  %vm1641_vm3 = vmor %vm1639_vm15, %vm1640_vm14  ;;  %vm1629_vm5 = vweird.f32 %v1601_v61 }
 0x3c2   : > { %2741 = vst.msk [vmem:[%s3695_s14 + $0x10] sm:$0xf] %vm975_vm2, %v1461_v38 }
 0x3c3   : > { %2742 = vst.msk [vmem:[%s3695_s14 + $0x14] sm:$0xf] %vm975_vm2, %v1462_v17  ;;  %v1606_v17 = vmul.f32 0.5, %v1605_v30 }
 0x3c4   : > { %v2868_v28 = vpop.permute.xlu1 %2867 }
 0x3c5   : > { %v2870_v32 = vunpack.i.h.bf16 %v2868_v28  ;;  %v2869_v35 = vunpack.i.l.bf16 %v2868_v28  ;;  %v1607_v28 = vsub.f32 1.5, %v1606_v17 }
 0x3c6   : > { %2892 = vrot.lane.b32.xlu1 %v3980_v60, %s3154_s20  ;;  %v1635_v60 = vmul.f32 %v3021_v8, %v1634_v44  ;;  %s3160_s20 = smov 80  }
 0x3c7   : > { %v1356_v58 = vsel %vm966_vm0, %v2869_v35, %v2874_v7  ;;  %v1357_v21 = vsel %vm966_vm0, %v2870_v32, %v2875_v5  ;;  %v3023_v12 = vpop.eup %3022  ;;  %v1608_v5 = vmul.f32 %v3019_v52, %v1607_v28 }
 0x3c8   : > { %v1360_v11 = vpack.c.bf16 %v1356_v58, %v1356_v58  ;;  %v1361_v38 = vpack.c.bf16 %v1357_v21, %v1357_v21  ;;  %v1636_v7 = vmul.f32 0.5, %v1635_v60  ;;  %v1624_v32 = vmul.f32 %v3023_v12, %v1601_v61 }
 0x3c9   : > { %v1612_v35 = vsel %vm1611_vm13, %v3019_v52, %v1608_v5  ;;  %v4567_v58 = vpack.i.bf16 %v4090_v3, %v4084_v26  ;;  %vm1630_vm4 = vweird.f32 %v3023_v12 }
 0x3ca   : > { %2737 = vst.msk [vmem:[%s3658_s10 + $0x10] sm:$0xf] %vm975_vm2, %v1360_v11  ;;  %v1637_v30 = vsub.f32 1.5, %v1636_v7  ;;  %v1625_v21 = vmul.f32 %v3023_v12, %v1624_v32  ;;  %v4149_v44 = vmul.f32 %v1612_v35, %v3357_v23  ;;  %vm1631_vm6 = vmor %vm1629_vm5, %vm1630_vm4  ;;  %v1711_v35 = vmul.f32 %v4110_v46, %v4029_v57 }
 0x3cb   : > { %2738 = vst.msk [vmem:[%s3658_s10 + $0x14] sm:$0xf] %vm975_vm2, %v1361_v38 }
 0x3cc   : > { %v1720_v50 = vpop.permute.xlu1 %1719  ;;  %v1626_v11 = vmul.f32 0.5, %v1625_v21  ;;  %v1800_v63 = vmul.f32 %v4034_v34, %v4149_v44 }
 0x3cd   : > { %v1729_v37 = vmul.f32 %v1720_v50, %v4003_v36 }
 0x3ce   : > { %2897 = vrot.lane.b32.xlu1 %v2896_v6, %s3155_s25  ;;  %v1638_v6 = vmul.f32 %v3021_v8, %v1637_v30  ;;  %v1627_v52 = vsub.f32 1.5, %v1626_v11 }
 0x3cf   : > { %1739 = vrot.lane.b32.xlu0 %v1729_v37, %s3151_s12 }
 0x3d0   : > { %v1642_v38 = vsel %vm1641_vm3, %v3021_v8, %v1638_v6  ;;  %v1628_v26 = vmul.f32 %v3023_v12, %v1627_v52  ;;  %v1596_v8 = vmul.f32 %v4010_v20, %v3530_v4  ;;  %v2878_v6 = vpop.permute.xlu0 %2877 }
 0x3d1   : > { %v4155_v17 = vmul.f32 %v1642_v38, %v3510_v13  ;;  %v2880_v38 = vunpack.i.h.bf16 %v2878_v6  ;;  %v2879_v57 = vunpack.i.l.bf16 %v2878_v6 }
 0x3d2   : > { %v1632_v47 = vsel %vm1631_vm6, %v3023_v12, %v1628_v26  ;;  %v1600_v28 = vadd.f32 1.1920929e-07, %v1596_v8  ;;  %v1712_v12 = vmul.f32 %v4086_v54, %v4032_v25 }
 0x3d3   : > { %v1803_v3 = vmul.f32 %v4051_v62, %v4155_v17  ;;  %v4161_v37 = vmul.f32 %v1632_v47, %v3450_v48 }
 0x3d4   : > { %3024 = vrsqrt.f32 %v1600_v28  ;;  %vm1619_vm8 = vweird.f32 %v1600_v28 }
 0x3d5   : > { %v1830_v34 = vmul.f32 %v1720_v50, %v4161_v37 }
 0x3d7   : > { %2902 = vrot.lane.b32.xlu0 %v4567_v58, %s3155_s25 }
 0x3da   : > { %v3025_v60 = vpop.eup %3024 }
 0x3db   : > { %v1614_v5 = vmul.f32 %v3025_v60, %v1600_v28  ;;  %vm1620_vm7 = vweird.f32 %v3025_v60 }
 0x3dc   : > { %vm1621_vm9 = vmor %vm1619_vm8, %vm1620_vm7 }
 0x3dd   : > { %v1615_v62 = vmul.f32 %v3025_v60, %v1614_v5 }
 0x3df   : > { %1808 = vrot.lane.b32.xlu0 %v1800_v63, %s3157_s27  ;;  %v1616_v61 = vmul.f32 0.5, %v1615_v62 }
 0x3e1   : > { %v1617_v7 = vsub.f32 1.5, %v1616_v61 }
 0x3e3   : > { %v1618_v30 = vmul.f32 %v3025_v60, %v1617_v7 }
 0x3e5   : > { %v1622_v11 = vsel %vm1621_vm9, %v3025_v60, %v1618_v30  ;;  %v2888_v60 = vpop.permute.xlu0 %2887 }
 0x3e6   : > { %v4173_v63 = vmul.f32 %v1622_v11, %v3420_v39  ;;  %v2890_v62 = vunpack.i.h.bf16 %v2888_v60  ;;  %v2889_v61 = vunpack.i.l.bf16 %v2888_v60 }
 0x3e7   : > { %1814 = vrot.lane.b32.xlu0 %v1803_v3, %s3157_s27 }
 0x3e8   : > { %v1801_v3 = vmul.f32 %v4038_v10, %v4173_v63 }
 0x3ef   : > { %1840 = vrot.lane.b32.xlu0 %v1830_v34, %s3151_s12 }
 0x3f3   : > { %v1736_v32 = vpop.permute.xlu2 %1735 }
 0x3f4   : > { %v1747_v58 = vsub.f32 %v1711_v35, %v1736_v32  ;;  %v1828_v32 = vmul.f32 %v4094_v9, %v4149_v44 }
 0x428   : > { %v1738_v50 = vpop.permute.xlu1 %1737 }
 0x429   : > { %v1748_v21 = vsub.f32 %v1712_v12, %v1738_v50 }
 0x42b   : > { %v2906_v20 = vpack.i.bf16 %v1748_v21, %v1747_v58  ;;  %v1742_v58 = vpop.permute.xlu2 %1741  ;;  %v1713_v21 = vmul.f32 %v4099_v29, %v4003_v36  ;;  %v1829_v36 = vmul.f32 %v4114_v18, %v4173_v63  ;;  %v1796_v18 = vmul.f32 %v4016_v53, %v4149_v44 }
 0x42c   : > { %v1827_v53 = vmul.f32 %v4118_v42, %v4155_v17 }
 0x42d   : > { %2907 = vrot.lane.b32.xlu2 %v2906_v20, %s3155_s25  ;;  %v1714_v20 = vmul.f32 %v4118_v42, %v4049_v2 }
 0x42f   : > { %v1750_v6 = vsub.f32 %v1714_v20, %v1742_v58 }
 0x430   : > { %v2883_v25 = vpop.permute.xlu1 %2882 }
 0x431   : > { %v2885_v52 = vunpack.i.h.bf16 %v2883_v25  ;;  %v2884_v26 = vunpack.i.l.bf16 %v2883_v25  ;;  %v1831_v25 = vmul.f32 %v4101_v19, %v4155_v17 }
 0x433   : > { %v1358_v47 = vsel %vm966_vm0, %v2879_v57, %v2884_v26  ;;  %v1359_v34 = vsel %vm966_vm0, %v2880_v38, %v2885_v52  ;;  %v1802_v57 = vmul.f32 %v4005_v14, %v4161_v37 }
 0x434   : > { %v1362_v8 = vpack.c.bf16 %v1358_v47, %v1358_v47  ;;  %v1363_v28 = vpack.c.bf16 %v1359_v34, %v1359_v34 }
 0x435   : > { %1810 = vrot.lane.b32.xlu2 %v1801_v3, %s3157_s27 }
 0x436   : > { %2739 = vst.msk [vmem:[%s3658_s10 + $0x18] sm:$0xf] %vm975_vm2, %v1362_v8 }
 0x437   : > { %2740 = vst.msk [vmem:[%s3658_s10 + $0x1c] sm:$0xf] %vm975_vm2, %v1363_v28 }
 0x438   : > { %v2893_v5 = vpop.permute.xlu1 %2892 }
 0x439   : > { %v2895_v7 = vunpack.i.h.bf16 %v2893_v5  ;;  %v2894_v10 = vunpack.i.l.bf16 %v2893_v5 }
 0x43b   : > { %v1459_v12 = vsel %vm966_vm0, %v2889_v61, %v2894_v10  ;;  %v1460_v35 = vsel %vm966_vm0, %v2890_v62, %v2895_v7  ;;  %v1797_v62 = vmul.f32 %v4000_v56, %v4173_v63 }
 0x43c   : > { %v1463_v50 = vpack.c.bf16 %v1459_v12, %v1459_v12  ;;  %v1464_v30 = vpack.c.bf16 %v1460_v35, %v1460_v35 }
 0x43d   : > { %1836 = vrot.lane.b32.xlu2 %v1828_v32, %s3151_s12 }
 0x43e   : > { %2743 = vst.msk [vmem:[%s3695_s14 + $0x18] sm:$0xf] %vm975_vm2, %v1463_v50 }
 0x43f   : > { %2744 = vst.msk [vmem:[%s3695_s14 + $0x1c] sm:$0xf] %vm975_vm2, %v1464_v30  ;;  %v1826_v30 = vmul.f32 %v4099_v29, %v4161_v37 }
 0x440   : > { %v2898_v52 = vpop.permute.xlu1 %2897 }
 0x441   : > { %v1740_v9 = vpop.permute.xlu0 %1739  ;;  %v2900_v26 = vunpack.i.h.bf16 %v2898_v52  ;;  %v2899_v3 = vunpack.i.l.bf16 %v2898_v52 }
 0x442   : > { %v1749_v11 = vsub.f32 %v1713_v21, %v1740_v9  ;;  %v4568_v9 = vld [vmem:[#allocation16_spill] sm:$0xff] }
 0x444   : > { %v2911_v38 = vpack.i.bf16 %v1750_v6, %v1749_v11  ;;  %v4569_v6 = vld [vmem:[#allocation12_spill] sm:$0xff] }
 0x445   : > { %1842 = vrot.lane.b32.xlu2 %v1831_v25, %s3151_s12 }
 0x446   : > { %2912 = vrot.lane.b32.xlu1 %v2911_v38, %s3155_s25 }
 0x449   : > { %v2903_v2 = vpop.permute.xlu0 %2902 }
 0x44a   : > { %v2905_v29 = vunpack.i.h.bf16 %v2903_v2  ;;  %v2904_v25 = vunpack.i.l.bf16 %v2903_v2 }
 0x44e   : > { %1812 = vrot.lane.b32.xlu1 %v1802_v57, %s3157_s27 }
 0x451   : > { %v1809_v8 = vpop.permute.xlu0 %1808 }
 0x452   : > { %v1820_v7 = vadd.f32 %v1809_v8, %v1796_v18  ;;  %v4572_v18 = vld [vmem:[#allocation17_spill] sm:$0xff] }
 0x456   : > { %1838 = vrot.lane.b32.xlu1 %v1829_v36, %s3151_s12 }
 0x459   : > { %v1815_v12 = vpop.permute.xlu0 %1814 }
 0x461   : > { %v1841_v50 = vpop.permute.xlu0 %1840 }
 0x462   : > { %v1850_v21 = vsub.f32 %v1826_v30, %v1841_v50 }
 0x487   : > { %v2908_v19 = vpop.permute.xlu2 %2907 }
 0x488   : > { %v2910_v47 = vunpack.i.h.bf16 %v2908_v19  ;;  %v2909_v34 = vunpack.i.l.bf16 %v2908_v19 }
 0x48a   : > { %v1784_v28 = vsel %vm966_vm0, %v2900_v26, %v2910_v47  ;;  %v1783_v14 = vsel %vm966_vm0, %v2899_v3, %v2909_v34  ;;  %v1799_v26 = vmul.f32 %v4022_v55, %v4155_v17  ;;  %v1798_v3 = vmul.f32 %v4024_v59, %v4161_v37  ;;  %v4570_v59 = vld [vmem:[#allocation9_spill] sm:$0xff]  ;;  %v4571_v37 = vld [vmem:[#allocation10_spill] sm:$0xff] }
 0x48b   : > { %v1788_v60 = vpack.c.bf16 %v1784_v28, %v1784_v28  ;;  %v1787_v5 = vpack.c.bf16 %v1783_v14, %v1783_v14  ;;  %v1825_v28 = vmul.f32 %v4086_v54, %v4173_v63  ;;  %v1824_v14 = vmul.f32 %v4110_v46, %v4149_v44  ;;  %v4573_v54 = vld [vmem:[#allocation8_spill] sm:$0xff]  ;;  %v4574_v46 = vld [vmem:[#allocation11_spill] sm:$0xff]  ;;  %v4575_v44 = vld [vmem:[#allocation14_spill] sm:$0xff] }
 0x48c   : > { %v1823_v2 = vadd.f32 %v1815_v12, %v1799_v26 }
 0x48d   : > { %2750 = vst.msk [vmem:[%s3658_s10 + $0x24] sm:$0xf] %vm975_vm2, %v1788_v60 }
 0x48e   : > { %2749 = vst.msk [vmem:[%s3658_s10 + $0x20] sm:$0xf] %vm975_vm2, %v1787_v5 }
 0x48f   : > { %v1811_v61 = vpop.permute.xlu2 %1810 }
 0x490   : > { %v1821_v10 = vadd.f32 %v1811_v61, %v1797_v62 }
 0x492   : > { %v2916_v32 = vpack.i.bf16 %v1821_v10, %v1820_v7 }
 0x494   : > { %2917 = vrot.lane.b32.xlu1 %v2916_v32, %s3155_s25 }
 0x497   : > { %v1837_v35 = vpop.permute.xlu2 %1836 }
 0x498   : > { %v1848_v55 = vsub.f32 %v1824_v14, %v1837_v35 }
 0x49f   : > { %v1843_v58 = vpop.permute.xlu2 %1842 }
 0x4a0   : > { %v1851_v20 = vsub.f32 %v1827_v53, %v1843_v58 }
 0x4a2   : > { %v2931_v56 = vpack.i.bf16 %v1851_v20, %v1850_v21 }
 0x4a4   : > { %2932 = vrot.lane.b32.xlu1 %v2931_v56, %s3155_s25 }
 0x4ac   : > { %1901 = vrot.lane.b32.xlu1 %v4568_v9, %s3155_s25 }
 0x4b4   : > { %1916 = vrot.lane.b32.xlu1 %v4569_v6, %s3160_s20 }
 0x4b8   : > { %v2913_v11 = vpop.permute.xlu1 %2912 }
 0x4b9   : > { %v2915_v38 = vunpack.i.h.bf16 %v2913_v11  ;;  %v2914_v42 = vunpack.i.l.bf16 %v2913_v11 }
 0x4bb   : > { %v1785_v57 = vsel %vm966_vm0, %v2904_v25, %v2914_v42  ;;  %v1786_v36 = vsel %vm966_vm0, %v2905_v29, %v2915_v38 }
 0x4bc   : > { %v1789_v52 = vpack.c.bf16 %v1785_v57, %v1785_v57  ;;  %v1790_v19 = vpack.c.bf16 %v1786_v36, %v1786_v36 }
 0x4be   : > { %2751 = vst.msk [vmem:[%s3658_s10 + $0x28] sm:$0xf] %vm975_vm2, %v1789_v52 }
 0x4bf   : > { %2752 = vst.msk [vmem:[%s3658_s10 + $0x2c] sm:$0xf] %vm975_vm2, %v1790_v19 }
 0x4c0   : > { %v1813_v47 = vpop.permute.xlu1 %1812 }
 0x4c1   : > { %v1822_v34 = vadd.f32 %v1813_v47, %v1798_v3 }
 0x4c3   : > { %v2921_v8 = vpack.i.bf16 %v1823_v2, %v1822_v34 }
 0x4c5   : > { %2922 = vrot.lane.b32.xlu0 %v2921_v8, %s3155_s25 }
 0x4c8   : > { %v1839_v60 = vpop.permute.xlu1 %1838 }
 0x4c9   : > { %v1849_v17 = vsub.f32 %v1825_v28, %v1839_v60 }
 0x4cb   : > { %v2926_v5 = vpack.i.bf16 %v1849_v17, %v1848_v55 }
 0x4cd   : > { %2927 = vrot.lane.b32.xlu2 %v2926_v5, %s3155_s25  ;;  %1897 = vrot.lane.b32.xlu0 %v4570_v59, %s3155_s25 }
 0x4d5   : > { %1899 = vrot.lane.b32.xlu2 %v4571_v37, %s3155_s25  ;;  %1903 = vrot.lane.b32.xlu0 %v4572_v18, %s3155_s25  ;;  %s3161_s25 = smov 48  }
 0x4dd   : > { %1914 = vrot.lane.b32.xlu2 %v4573_v54, %s3160_s20  ;;  %1918 = vrot.lane.b32.xlu0 %v4574_v46, %s3160_s20 }
 0x4e5   : > { %1920 = vrot.lane.b32.xlu2 %v4575_v44, %s3160_s20 }
 0x506   : > { %v2918_v63 = vpop.permute.xlu1 %2917 }
 0x507   : > { %v2920_v12 = vunpack.i.h.bf16 %v2918_v63  ;;  %v2919_v35 = vunpack.i.l.bf16 %v2918_v63 }
 0x516   : > { %v2933_v62 = vpop.permute.xlu1 %2932 }
 0x517   : > { %v2935_v6 = vunpack.i.h.bf16 %v2933_v62  ;;  %v2934_v25 = vunpack.i.l.bf16 %v2933_v62 }
 0x51e   : > { %v1902_v61 = vpop.permute.xlu1 %1901 }
 0x51f   : > { %2759 = vst.msk [vmem:[%s3380_s24 + $0x28] sm:$0xf] %vm975_vm2, %v1902_v61 }
 0x526   : > { %v1917_v7 = vpop.permute.xlu1 %1916 }
 0x527   : > { %v1929_v10 = vsel %vm734_vm1, %v1917_v7, 0.0  ;;  %v2928_v32 = vpop.permute.xlu2 %2927 }
 0x528   : > { %v2930_v50 = vunpack.i.h.bf16 %v2928_v32  ;;  %v2929_v30 = vunpack.i.l.bf16 %v2928_v32  ;;  %1930 = vadd.xlane.f32.xlu0 %v1929_v10 }
 0x52a   : > { %v1884_v53 = vsel %vm966_vm0, %v2919_v35, %v2929_v30  ;;  %v1885_v58 = vsel %vm966_vm0, %v2920_v12, %v2930_v50 }
 0x52b   : > { %v1888_v21 = vpack.c.bf16 %v1884_v53, %v1884_v53  ;;  %v1889_v20 = vpack.c.bf16 %v1885_v58, %v1885_v58 }
 0x52d   : > { %2753 = vst.msk [vmem:[%s3695_s14 + $0x20] sm:$0xf] %vm975_vm2, %v1888_v21 }
 0x52e   : > { %2754 = vst.msk [vmem:[%s3695_s14 + $0x24] sm:$0xf] %vm975_vm2, %v1889_v20 }
 0x52f   : > { %v1900_v56 = vpop.permute.xlu2 %1899 }
 0x530   : > { %2758 = vst.msk [vmem:[%s3380_s24 + $0x24] sm:$0xf] %vm975_vm2, %v1900_v56 }
 0x537   : > { %v1915_v11 = vpop.permute.xlu2 %1914  ;;  %v2923_v29 = vpop.permute.xlu0 %2922 }
 0x538   : > { %v1926_v38 = vsel %vm734_vm1, %v1915_v11, 0.0  ;;  %v2925_v42 = vunpack.i.h.bf16 %v2923_v29  ;;  %v2924_v57 = vunpack.i.l.bf16 %v2923_v29 }
 0x539   : > { %1927 = vadd.xlane.f32.xlu1 %v1926_v38 }
 0x53a   : > { %v1887_v36 = vsel %vm966_vm0, %v2925_v42, %v2935_v6  ;;  %v1886_v52 = vsel %vm966_vm0, %v2924_v57, %v2934_v25 }
 0x53b   : > { %v1891_v19 = vpack.c.bf16 %v1887_v36, %v1887_v36  ;;  %v1890_v26 = vpack.c.bf16 %v1886_v52, %v1886_v52 }
 0x53c   : > { %1996 = vrot.lane.b32.xlu0 %v3424_v40, %s3160_s20 }
 0x53d   : > { %2756 = vst.msk [vmem:[%s3695_s14 + $0x2c] sm:$0xf] %vm975_vm2, %v1891_v19 }
 0x53e   : > { %2755 = vst.msk [vmem:[%s3695_s14 + $0x28] sm:$0xf] %vm975_vm2, %v1890_v26 }
 0x53f   : > { %v1921_v3 = vpop.permute.xlu2 %1920  ;;  %v1898_v47 = vpop.permute.xlu0 %1897 }
 0x540   : > { %v1935_v2 = vsel %vm734_vm1, %v1921_v3, 0.0  ;;  %2757 = vst.msk [vmem:[%s3380_s24 + $0x20] sm:$0xf] %vm975_vm2, %v1898_v47 }
 0x541   : > { %1936 = vadd.xlane.f32.xlu1 %v1935_v2 }
 0x544   : > { %2000 = vrot.lane.b32.xlu0 %v3516_v16, %s3160_s20 }
 0x547   : > { %v1904_v34 = vpop.permute.xlu0 %1903 }
 0x548   : > { %2760 = vst.msk [vmem:[%s3380_s24 + $0x2c] sm:$0xf] %vm975_vm2, %v1904_v34 }
 0x54f   : > { %v1919_v8 = vpop.permute.xlu0 %1918 }
 0x550   : > { %v1932_v40 = vsel %vm734_vm1, %v1919_v8, 0.0 }
 0x551   : > { %1933 = vadd.xlane.f32.xlu2 %v1932_v40 }
 0x55a   : > { %1998 = vrot.lane.b32.xlu1 %v3454_v49, %s3160_s20 }
 0x569   : > { %1994 = vrot.lane.b32.xlu2 %v3361_v24, %s3160_s20 }
 0x59b   : > { %v1931_v28 = vpop.xlane.xlu0 %1930 }
 0x59c   : > { %v1939_v7 = vmul.f32 %v1931_v28, %v3530_v4 }
 0x59e   : > { %v1943_v32 = vadd.f32 1.1920929e-07, %v1939_v7 }
 0x5a0   : > { %vm1962_vm13 = vweird.f32 %v1943_v32 }
 0x5ac   : > { %v1928_v55 = vpop.xlane.xlu1 %1927 }
 0x5ad   : > { %v1938_v63 = vmul.f32 %v1928_v55, %v3530_v4 }
 0x5ae   : > { %v1997_v14 = vpop.permute.xlu0 %1996 }
 0x5af   : > { %v2009_v60 = vsel %vm734_vm1, %v1997_v14, 0.0 }
 0x5b0   : > { %2010 = vadd.xlane.f32.xlu1 %v2009_v60 }
 0x5b4   : > { %v1937_v16 = vpop.xlane.xlu1 %1936 }
 0x5b5   : > { %v1941_v20 = vmul.f32 %v1937_v16, %v3530_v4 }
 0x5b6   : > { %v2001_v24 = vpop.permute.xlu0 %2000 }
 0x5b7   : > { %v2015_v44 = vsel %vm734_vm1, %v2001_v24, 0.0  ;;  %v1945_v11 = vadd.f32 1.1920929e-07, %v1941_v20 }
 0x5b9   : > { %vm1982_vm6 = vweird.f32 %v1945_v11 }
 0x5c4   : > { %v1934_v17 = vpop.xlane.xlu2 %1933 }
 0x5c9   : > { %2070 = vrot.lane.b32.xlu1 %v3915_v51, %s3161_s25  ;;  %v4304_v51 = vld [vmem:[%s4516_s4 + $0x10] sm:$0xff] }
 0x5cc   : > { %v1999_v5 = vpop.permute.xlu1 %1998  ;;  %v1995_v54 = vpop.permute.xlu2 %1994 }
 0x5cd   : > { %v2012_v46 = vsel %vm734_vm1, %v1999_v5, 0.0  ;;  %v2006_v49 = vsel %vm734_vm1, %v1995_v54, 0.0 }
 0x5ce   : > { %2013 = vadd.xlane.f32.xlu0 %v2012_v46  ;;  %2007 = vadd.xlane.f32.xlu2 %v2006_v49 }
 0x5d1   : > { %2086 = vrot.lane.b32.xlu1 %v3938_v41, %s3162_s22 }
 0x5d6   : > { %2016 = vadd.xlane.f32.xlu2 %v2015_v44 }
 0x5d9   : > { %2092 = vrot.lane.b32.xlu1 %v3957_v0, %s3162_s22 }
 0x5e2   : > { %2072 = vrot.lane.b32.xlu0 %v3886_v1, %s3161_s25  ;;  %v1942_v1 = vadd.f32 1.1920929e-07, %v1938_v63 }
 0x5e4   : > { %3026 = vrsqrt.f32 %v1942_v1  ;;  %vm1952_vm10 = vweird.f32 %v1942_v1 }
 0x5e5   : > { %3028 = vrsqrt.f32 %v1943_v32 }
 0x5ea   : > { %2076 = vrot.lane.b32.xlu0 %v3858_v27, %s3161_s25  ;;  %v3027_v62 = vpop.eup %3026 }
 0x5eb   : > { %v1947_v27 = vmul.f32 %v3027_v62, %v1942_v1  ;;  %vm1953_vm1 = vweird.f32 %v3027_v62  ;;  %v3029_v30 = vpop.eup %3028 }
 0x5ec   : > { %vm1954_vm11 = vmor %vm1952_vm10, %vm1953_vm1  ;;  %v1957_v56 = vmul.f32 %v3029_v30, %v1943_v32  ;;  %vm1963_vm12 = vweird.f32 %v3029_v30 }
 0x5ed   : > { %v1948_v61 = vmul.f32 %v3027_v62, %v1947_v27  ;;  %vm1964_vm14 = vmor %vm1962_vm13, %vm1963_vm12 }
 0x5ee   : > { %2074 = vrot.lane.b32.xlu2 %v4304_v51, %s3161_s25  ;;  %v1958_v29 = vmul.f32 %v3029_v30, %v1957_v56 }
 0x5ef   : > { %v1949_v10 = vmul.f32 0.5, %v1948_v61 }
 0x5f0   : > { %v1959_v52 = vmul.f32 0.5, %v1958_v29 }
 0x5f1   : > { %v1950_v12 = vsub.f32 1.5, %v1949_v10 }
 0x5f2   : > { %2090 = vrot.lane.b32.xlu0 %v3898_v15, %s3162_s22  ;;  %v1940_v15 = vmul.f32 %v1934_v17, %v3530_v4  ;;  %v1960_v26 = vsub.f32 1.5, %v1959_v52 }
 0x5f3   : > { %v1951_v50 = vmul.f32 %v3027_v62, %v1950_v12 }
 0x5f4   : > { %v1944_v58 = vadd.f32 1.1920929e-07, %v1940_v15  ;;  %v1961_v8 = vmul.f32 %v3029_v30, %v1960_v26 }
 0x5f5   : > { %v1955_v53 = vsel %vm1954_vm11, %v3027_v62, %v1951_v50  ;;  %v3053_v50 = vld [vmem:[%s4516_s4] sm:$0xff] }
 0x5f6   : > { %2088 = vrot.lane.b32.xlu2 %v3972_v45, %s3162_s22  ;;  %v1986_v6 = vmul.f32 0.25, %v1955_v53  ;;  %3030 = vrsqrt.f32 %v1944_v58  ;;  %v1965_v28 = vsel %vm1964_vm14, %v3029_v30, %v1961_v8  ;;  %vm1972_vm3 = vweird.f32 %v1944_v58 }
 0x5f7   : > { %3032 = vrsqrt.f32 %v1945_v11  ;;  %v1987_v55 = vmul.f32 0.25, %v1965_v28 }
 0x5f8   : > { %v4323_v38 = vmul.f32 %v1986_v6, %v3355_v22 }
 0x5f9   : > { %v4341_v46 = vmul.f32 %v1987_v55, %v3404_v33  ;;  %v3051_v33 = vld [vmem:[%s4516_s4 + $0x8] sm:$0xff] }
 0x5fc   : > { %v3031_v36 = vpop.eup %3030 }
 0x5fd   : > { %v1967_v19 = vmul.f32 %v3031_v36, %v1944_v58  ;;  %v3033_v47 = vpop.eup %3032  ;;  %vm1973_vm15 = vweird.f32 %v3031_v36 }
 0x5fe   : > { %v1977_v22 = vmul.f32 %v3033_v47, %v1945_v11  ;;  %vm1974_vm4 = vmor %vm1972_vm3, %vm1973_vm15  ;;  %vm1983_vm5 = vweird.f32 %v3033_v47 }
 0x5ff   : > { %v1968_v2 = vmul.f32 %v3031_v36, %v1967_v19  ;;  %vm1984_vm7 = vmor %vm1982_vm6, %vm1983_vm5 }
 0x600   : > { %v1978_v14 = vmul.f32 %v3033_v47, %v1977_v22 }
 0x601   : > { %v1969_v40 = vmul.f32 0.5, %v1968_v2 }
 0x602   : > { %v1979_v5 = vmul.f32 0.5, %v1978_v14 }
 0x603   : > { %v1970_v16 = vsub.f32 1.5, %v1969_v40 }
 0x605   : > { %v1971_v54 = vmul.f32 %v3031_v36, %v1970_v16 }
 0x607   : > { %v1975_v44 = vsel %vm1974_vm4, %v3031_v36, %v1971_v54 }
 0x623   : > { %v4314_v35 = vpop.xlane.xlu1 %2010 }
 0x624   : > { %v2019_v15 = vmul.f32 %v4314_v35, %v3530_v4 }
 0x626   : > { %v2023_v30 = vadd.f32 1.1920929e-07, %v2019_v15 }
 0x628   : > { %3034 = vrsqrt.f32 %v2023_v30  ;;  %vm2042_vm9 = vweird.f32 %v2023_v30 }
 0x62e   : > { %v3035_v58 = vpop.eup %3034 }
 0x62f   : > { %v2037_v56 = vmul.f32 %v3035_v58, %v2023_v30  ;;  %vm2043_vm8 = vweird.f32 %v3035_v58 }
 0x630   : > { %vm2044_vm1 = vmor %vm2042_vm9, %vm2043_vm8 }
 0x631   : > { %v2038_v29 = vmul.f32 %v3035_v58, %v2037_v56 }
 0x633   : > { %v2039_v36 = vmul.f32 0.5, %v2038_v29 }
 0x635   : > { %v2040_v26 = vsub.f32 1.5, %v2039_v36 }
 0x637   : > { %v2041_v2 = vmul.f32 %v3035_v58, %v2040_v26 }
 0x639   : > { %v2045_v28 = vsel %vm2044_vm1, %v3035_v58, %v2041_v2 }
 0x63a   : > { %v4396_v16 = vmul.f32 %v2045_v28, %v3420_v39 }
 0x63b   : > { %v4317_v21 = vpop.permute.xlu1 %2070 }
 0x641   : > { %v4320_v25 = vpop.xlane.xlu2 %2007  ;;  %v4330_v34 = vpop.xlane.xlu0 %2013 }
 0x643   : > { %v4325_v42 = vpop.permute.xlu1 %2086 }
 0x644   : > { %v2098_v57 = vmul.f32 %v4325_v42, %v4323_v38 }
 0x646   : > { %2106 = vrot.lane.b32.xlu2 %v2098_v57, %s3157_s27 }
 0x649   : > { %v2017_v3 = vpop.xlane.xlu2 %2016 }
 0x64a   : > { %v2021_v20 = vmul.f32 %v2017_v3, %v3530_v4 }
 0x64b   : > { %v4363_v32 = vpop.permute.xlu1 %2092 }
 0x64c   : > { %v2025_v11 = vadd.f32 1.1920929e-07, %v2021_v20 }
 0x64e   : > { %2138 = vrot.lane.b32.xlu2 %v3938_v41, %s3161_s25  ;;  %v1980_v41 = vsub.f32 1.5, %v1979_v5  ;;  %vm2062_vm14 = vweird.f32 %v2025_v11 }
 0x650   : > { %v1981_v1 = vmul.f32 %v3033_v47, %v1980_v41 }
 0x651   : > { %v4334_v60 = vpop.permute.xlu2 %2074 }
 0x652   : > { %v1985_v62 = vsel %vm1984_vm7, %v3033_v47, %v1981_v1  ;;  %v2020_v1 = vmul.f32 %v4330_v34, %v3530_v4 }
 0x653   : > { %v1989_v61 = vmul.f32 0.25, %v1985_v62 }
 0x654   : > { %v4336_v17 = vpop.permute.xlu0 %2072 }
 0x655   : > { %v4367_v12 = vmul.f32 %v1989_v61, %v3436_v43  ;;  %v3054_v43 = vld [vmem:[%s4516_s4 + $0x18] sm:$0xff]  ;;  %v2083_v34 = vmul.f32 %v4336_v17, %v4341_v46 }
 0x656   : > { %2144 = vrot.lane.b32.xlu2 %v3957_v0, %s3161_s25  ;;  %v1988_v0 = vmul.f32 0.25, %v1975_v44 }
 0x658   : > { %v4355_v27 = vmul.f32 %v1988_v0, %v3396_v31  ;;  %v2101_v31 = vmul.f32 %v4363_v32, %v4367_v12  ;;  %v2024_v0 = vadd.f32 1.1920929e-07, %v2020_v1 }
 0x659   : > { %v4343_v49 = vpop.permute.xlu2 %2088 }
 0x65a   : > { %v2099_v24 = vmul.f32 %v4343_v49, %v4341_v46  ;;  %v2224_v41 = vmul.f32 %v4343_v49, %v4396_v16  ;;  %v2084_v56 = vmul.f32 %v4334_v60, %v4355_v27  ;;  %vm2052_vm4 = vweird.f32 %v2024_v0 }
 0x65c   : > { %2108 = vrot.lane.b32.xlu0 %v2099_v24, %s3157_s27  ;;  %v4348_v63 = vpop.permute.xlu0 %2076 }
 0x65e   : > { %2124 = vrot.lane.b32.xlu2 %v3051_v33, %s3162_s22 }
 0x664   : > { %2140 = vrot.lane.b32.xlu0 %v3972_v45, %s3161_s25  ;;  %v4359_v7 = vpop.permute.xlu0 %2090  ;;  %v3052_v45 = vld [vmem:[%s4517_s5 + $0x10] sm:$0xff] }
 0x665   : > { %v2100_v10 = vmul.f32 %v4359_v7, %v4355_v27 }
 0x667   : > { %2110 = vrot.lane.b32.xlu1 %v2100_v10, %s3157_s27 }
 0x66c   : > { %2112 = vrot.lane.b32.xlu0 %v2101_v31, %s3157_s27 }
 0x66f   : > { %2142 = vrot.lane.b32.xlu1 %v3052_v45, %s3161_s25 }
 0x674   : > { %2126 = vrot.lane.b32.xlu0 %v4304_v51, %s3162_s22  ;;  %v2018_v51 = vmul.f32 %v4320_v25, %v3530_v4 }
 0x676   : > { %v2022_v53 = vadd.f32 1.1920929e-07, %v2018_v51 }
 0x677   : > { %2122 = vrot.lane.b32.xlu1 %v3053_v50, %s3162_s22 }
 0x678   : > { %3036 = vrsqrt.f32 %v2022_v53  ;;  %vm2032_vm11 = vweird.f32 %v2022_v53 }
 0x679   : > { %3038 = vrsqrt.f32 %v2025_v11 }
 0x67a   : > { %3040 = vrsqrt.f32 %v2024_v0 }
 0x67e   : > { %v3037_v57 = vpop.eup %3036 }
 0x67f   : > { %2128 = vrot.lane.b32.xlu1 %v3054_v43, %s3162_s22  ;;  %v2027_v52 = vmul.f32 %v3037_v57, %v2022_v53  ;;  %v3039_v47 = vpop.eup %3038  ;;  %vm2033_vm10 = vweird.f32 %v3037_v57 }
 0x680   : > { %v2057_v3 = vmul.f32 %v3039_v47, %v2025_v11  ;;  %vm2034_vm12 = vmor %vm2032_vm11, %vm2033_vm10  ;;  %vm2063_vm13 = vweird.f32 %v3039_v47  ;;  %v3041_v4 = vpop.eup %3040  ;;  %v2085_v11 = vmul.f32 %v4348_v63, %v4367_v12 }
 0x681   : > { %v2028_v25 = vmul.f32 %v3037_v57, %v2027_v52  ;;  %vm2064_vm15 = vmor %vm2062_vm14, %vm2063_vm13  ;;  %v2047_v31 = vmul.f32 %v3041_v4, %v2024_v0  ;;  %vm2053_vm3 = vweird.f32 %v3041_v4 }
 0x682   : > { %v2058_v55 = vmul.f32 %v3039_v47, %v2057_v3  ;;  %vm2054_vm5 = vmor %vm2052_vm4, %vm2053_vm3 }
 0x683   : > { %v2029_v8 = vmul.f32 0.5, %v2028_v25  ;;  %v2048_v30 = vmul.f32 %v3041_v4, %v2047_v31 }
 0x684   : > { %v2059_v54 = vmul.f32 0.5, %v2058_v55 }
 0x685   : > { %v2030_v14 = vsub.f32 1.5, %v2029_v8  ;;  %v2049_v51 = vmul.f32 0.5, %v2048_v30 }
 0x686   : > { %v2060_v44 = vsub.f32 1.5, %v2059_v54 }
 0x687   : > { %v2031_v5 = vmul.f32 %v3037_v57, %v2030_v14  ;;  %v2050_v20 = vsub.f32 1.5, %v2049_v51 }
 0x688   : > { %v2061_v39 = vmul.f32 %v3039_v47, %v2060_v44 }
 0x689   : > { %v2035_v24 = vsel %vm2034_vm12, %v3037_v57, %v2031_v5  ;;  %v2051_v29 = vmul.f32 %v3041_v4, %v2050_v20 }
 0x68a   : > { %v4404_v33 = vmul.f32 %v2035_v24, %v3357_v23  ;;  %v2065_v49 = vsel %vm2064_vm15, %v3039_v47, %v2061_v39  ;;  %v2082_v23 = vmul.f32 %v4317_v21, %v4323_v38 }
 0x68b   : > { %v4409_v61 = vmul.f32 %v2065_v49, %v3510_v13 }
 0x68c   : > { %v2223_v2 = vmul.f32 %v4325_v42, %v4404_v33 }
 0x68d   : > { %v2226_v3 = vmul.f32 %v4363_v32, %v4409_v61 }
 0x6a0   : > { %v2107_v6 = vpop.permute.xlu2 %2106 }
 0x6a1   : > { %v2118_v50 = vadd.f32 %v2107_v6, %v2082_v23  ;;  %v2219_v23 = vmul.f32 %v4317_v21, %v4404_v33 }
 0x6a8   : > { %v2139_v19 = vpop.permute.xlu2 %2138 }
 0x6a9   : > { %v2150_v35 = vmul.f32 %v2139_v19, %v4323_v38  ;;  %v2251_v62 = vmul.f32 %v2139_v19, %v4404_v33 }
 0x6ab   : > { %2158 = vrot.lane.b32.xlu2 %v2150_v35, %s3151_s12  ;;  %v2055_v35 = vsel %vm2054_vm5, %v3041_v4, %v2051_v29  ;;  %v2220_v4 = vmul.f32 %v4336_v17, %v4396_v16  ;;  %v2222_v17 = vmul.f32 %v4348_v63, %v4409_v61 }
 0x6ac   : > { %v2068_v25 = vmul.f32 %v2055_v35, %v3450_v48 }
 0x6ae   : > { %v2225_v47 = vmul.f32 %v4359_v7, %v2068_v25 }
 0x6b0   : > { %v2145_v22 = vpop.permute.xlu2 %2144 }
 0x6b1   : > { %v2153_v40 = vmul.f32 %v2145_v22, %v4367_v12  ;;  %v2254_v10 = vmul.f32 %v2145_v22, %v4409_v61 }
 0x6b3   : > { %2164 = vrot.lane.b32.xlu2 %v2153_v40, %s3151_s12 }
 0x6b8   : > { %v2125_v7 = vpop.permute.xlu2 %2124 }
 0x6b9   : > { %v2135_v28 = vmul.f32 %v2125_v7, %v4341_v46 }
 0x6bb   : > { %2233 = vrot.lane.b32.xlu2 %v2224_v41, %s3157_s27 }
 0x6c3   : > { %2259 = vrot.lane.b32.xlu2 %v2251_v62, %s3151_s12 }
 0x6cb   : > { %2265 = vrot.lane.b32.xlu2 %v2254_v10, %s3151_s12 }
 0x6ce   : > { %v2109_v45 = vpop.permute.xlu0 %2108 }
 0x6cf   : > { %v2119_v43 = vadd.f32 %v2109_v45, %v2083_v34 }
 0x6d1   : > { %v2936_v15 = vpack.i.bf16 %v2119_v43, %v2118_v50 }
 0x6d6   : > { %v2141_v13 = vpop.permute.xlu0 %2140 }
 0x6d7   : > { %v2151_v53 = vmul.f32 %v2141_v13, %v4341_v46  ;;  %v2252_v8 = vmul.f32 %v2141_v13, %v4396_v16  ;;  %v2221_v13 = vmul.f32 %v4334_v60, %v2068_v25 }
 0x6d9   : > { %v2111_v58 = vpop.permute.xlu1 %2110  ;;  %2160 = vrot.lane.b32.xlu0 %v2151_v53, %s3151_s12 }
 0x6da   : > { %v2120_v57 = vadd.f32 %v2111_v58, %v2084_v56 }
 0x6de   : > { %v2113_v6 = vpop.permute.xlu0 %2112 }
 0x6df   : > { %v2121_v36 = vadd.f32 %v2113_v6, %v2085_v11 }
 0x6e1   : > { %v2941_v52 = vpack.i.bf16 %v2121_v36, %v2120_v57  ;;  %v2143_v19 = vpop.permute.xlu1 %2142  ;;  %2937 = vrot.lane.b32.xlu0 %v2936_v15, %s3160_s20 }
 0x6e2   : > { %v2152_v26 = vmul.f32 %v2143_v19, %v4355_v27  ;;  %v2253_v48 = vmul.f32 %v2143_v19, %v2068_v25 }
 0x6e4   : > { %2162 = vrot.lane.b32.xlu1 %v2152_v26, %s3151_s12 }
 0x6e6   : > { %v2127_v22 = vpop.permute.xlu0 %2126 }
 0x6e7   : > { %v2136_v1 = vmul.f32 %v2127_v22, %v4355_v27 }
 0x6e9   : > { %2235 = vrot.lane.b32.xlu0 %v2225_v47, %s3157_s27  ;;  %v2123_v42 = vpop.permute.xlu1 %2122 }
 0x6ea   : > { %v2134_v14 = vmul.f32 %v2123_v42, %v4323_v38  ;;  %v2247_v43 = vmul.f32 %v2123_v42, %v4404_v33  ;;  %v2249_v33 = vmul.f32 %v2127_v22, %v2068_v25 }
 0x6ec   : > { %2231 = vrot.lane.b32.xlu1 %v2223_v2, %s3157_s27 }
 0x6f1   : > { %2261 = vrot.lane.b32.xlu0 %v2252_v8, %s3151_s12  ;;  %v2129_v32 = vpop.permute.xlu1 %2128 }
 0x6f2   : > { %v2137_v39 = vmul.f32 %v2129_v32, %v4367_v12  ;;  %v2248_v12 = vmul.f32 %v2125_v7, %v4396_v16  ;;  %v2250_v11 = vmul.f32 %v2129_v32, %v4409_v61 }
 0x6f4   : > { %2237 = vrot.lane.b32.xlu1 %v2226_v3, %s3157_s27 }
 0x6f9   : > { %2942 = vrot.lane.b32.xlu0 %v2941_v52, %s3160_s20 }
 0x6fc   : > { %2263 = vrot.lane.b32.xlu1 %v2253_v48, %s3151_s12 }
 0x705   : > { %v2159_v40 = vpop.permute.xlu2 %2158 }
 0x706   : > { %v2170_v5 = vsub.f32 %v2134_v14, %v2159_v40 }
 0x70d   : > { %v2165_v41 = vpop.permute.xlu2 %2164 }
 0x70e   : > { %v2173_v62 = vsub.f32 %v2137_v39, %v2165_v41 }
 0x715   : > { %v2234_v49 = vpop.permute.xlu2 %2233 }
 0x716   : > { %v2244_v31 = vadd.f32 %v2234_v49, %v2220_v4 }
 0x71d   : > { %v2260_v27 = vpop.permute.xlu2 %2259 }
 0x71e   : > { %v2271_v30 = vsub.f32 %v2247_v43, %v2260_v27 }
 0x725   : > { %v2266_v16 = vpop.permute.xlu2 %2265 }
 0x726   : > { %v2274_v6 = vsub.f32 %v2250_v11, %v2266_v16 }
 0x74b   : > { %v2161_v55 = vpop.permute.xlu0 %2160 }
 0x74c   : > { %v2171_v54 = vsub.f32 %v2135_v28, %v2161_v55 }
 0x74e   : > { %v2946_v24 = vpack.i.bf16 %v2171_v54, %v2170_v5 }
 0x750   : > { %2947 = vrot.lane.b32.xlu1 %v2946_v24, %s3160_s20 }
 0x753   : > { %v4442_v44 = vpop.permute.xlu0 %2937 }
 0x754   : > { %v2940_v47 = vunpack.i.h.bf16 %v4442_v44  ;;  %v2939_v2 = vunpack.i.l.bf16 %v4442_v44 }
 0x756   : > { %v2163_v0 = vpop.permute.xlu1 %2162 }
 0x757   : > { %v2172_v46 = vsub.f32 %v2136_v1, %v2163_v0 }
 0x759   : > { %v2951_v10 = vpack.i.bf16 %v2173_v62, %v2172_v46 }
 0x75b   : > { %2952 = vrot.lane.b32.xlu2 %v2951_v10, %s3160_s20  ;;  %v2236_v38 = vpop.permute.xlu0 %2235 }
 0x75c   : > { %v2245_v58 = vadd.f32 %v2236_v38, %v2221_v13 }
 0x75e   : > { %v2232_v34 = vpop.permute.xlu1 %2231 }
 0x75f   : > { %v2243_v45 = vadd.f32 %v2232_v34, %v2219_v23 }
 0x761   : > { %v2956_v50 = vpack.i.bf16 %v2244_v31, %v2243_v45 }
 0x763   : > { %2957 = vrot.lane.b32.xlu0 %v2956_v50, %s3160_s20  ;;  %v2262_v15 = vpop.permute.xlu0 %2261 }
 0x764   : > { %v2272_v51 = vsub.f32 %v2248_v12, %v2262_v15 }
 0x766   : > { %v2966_v21 = vpack.i.bf16 %v2272_v51, %v2271_v30  ;;  %v2238_v53 = vpop.permute.xlu1 %2237 }
 0x767   : > { %v2246_v20 = vadd.f32 %v2238_v53, %v2222_v17 }
 0x768   : > { %2967 = vrot.lane.b32.xlu2 %v2966_v21, %s3160_s20 }
 0x769   : > { %v2961_v56 = vpack.i.bf16 %v2246_v20, %v2245_v58 }
 0x76b   : > { %2962 = vrot.lane.b32.xlu1 %v2961_v56, %s3160_s20  ;;  %v2943_v63 = vpop.permute.xlu0 %2942 }
 0x76c   : > { %v2945_v36 = vunpack.i.h.bf16 %v2943_v63  ;;  %v2944_v52 = vunpack.i.l.bf16 %v2943_v63 }
 0x76e   : > { %v2264_v29 = vpop.permute.xlu1 %2263 }
 0x76f   : > { %v2273_v57 = vsub.f32 %v2249_v33, %v2264_v29 }
 0x770   : > { %2322 = vrot.lane.b32.xlu2 %v4571_v37, %s3160_s20 }
 0x771   : > { %v2971_v60 = vpack.i.bf16 %v2274_v6, %v2273_v57 }
 0x773   : > { %2972 = vrot.lane.b32.xlu0 %v2971_v60, %s3160_s20  ;;  %2320 = vrot.lane.b32.xlu1 %v4570_v59, %s3160_s20 }
 0x77b   : > { %2324 = vrot.lane.b32.xlu0 %v4568_v9, %s3160_s20  ;;  %2326 = vrot.lane.b32.xlu1 %v4572_v18, %s3160_s20 }
 0x7b5   : > { %v2953_v61 = vpop.permute.xlu2 %2952 }
 0x7b6   : > { %v2955_v19 = vunpack.i.h.bf16 %v2953_v61  ;;  %v2954_v37 = vunpack.i.l.bf16 %v2953_v61 }
 0x7b8   : > { %v2208_v35 = vsel %vm966_vm0, %v2944_v52, %v2954_v37  ;;  %v2209_v26 = vsel %vm966_vm0, %v2945_v36, %v2955_v19 }
 0x7b9   : > { %v2212_v25 = vpack.c.bf16 %v2208_v35, %v2208_v35  ;;  %v2213_v59 = vpack.c.bf16 %v2209_v26, %v2209_v26 }
 0x7bb   : > { %2763 = vst.msk [vmem:[%s3658_s10 + $0x38] sm:$0xf] %vm975_vm2, %v2212_v25 }
 0x7bc   : > { %2764 = vst.msk [vmem:[%s3658_s10 + $0x3c] sm:$0xf] %vm975_vm2, %v2213_v59 }
 0x7c2   : > { %v2948_v9 = vpop.permute.xlu1 %2947  ;;  %v2968_v18 = vpop.permute.xlu2 %2967 }
 0x7c3   : > { %v2950_v8 = vunpack.i.h.bf16 %v2948_v9  ;;  %v2949_v3 = vunpack.i.l.bf16 %v2948_v9  ;;  %v2970_v14 = vunpack.i.h.bf16 %v2968_v18  ;;  %v2969_v55 = vunpack.i.l.bf16 %v2968_v18 }
 0x7c5   : > { %v2206_v48 = vsel %vm966_vm0, %v2939_v2, %v2949_v3  ;;  %v2207_v7 = vsel %vm966_vm0, %v2940_v47, %v2950_v8 }
 0x7c6   : > { %v2210_v22 = vpack.c.bf16 %v2206_v48, %v2206_v48  ;;  %v2211_v40 = vpack.c.bf16 %v2207_v7, %v2207_v7 }
 0x7c8   : > { %2761 = vst.msk [vmem:[%s3658_s10 + $0x30] sm:$0xf] %vm975_vm2, %v2210_v22 }
 0x7c9   : > { %2762 = vst.msk [vmem:[%s3658_s10 + $0x34] sm:$0xf] %vm975_vm2, %v2211_v40 }
 0x7ca   : > { %v2323_v42 = vpop.permute.xlu2 %2322 }
 0x7cb   : > { %2770 = vst.msk [vmem:[%s3380_s24 + $0x34] sm:$0xf] %vm975_vm2, %v2323_v42 }
 0x7d5   : > { %v2958_v28 = vpop.permute.xlu0 %2957 }
 0x7d6   : > { %v2960_v5 = vunpack.i.h.bf16 %v2958_v28  ;;  %v2959_v54 = vunpack.i.l.bf16 %v2958_v28 }
 0x7d8   : > { %v2308_v41 = vsel %vm966_vm0, %v2960_v5, %v2970_v14  ;;  %v2307_v32 = vsel %vm966_vm0, %v2959_v54, %v2969_v55 }
 0x7d9   : > { %v2312_v24 = vpack.c.bf16 %v2308_v41, %v2308_v41  ;;  %v2311_v44 = vpack.c.bf16 %v2307_v32, %v2307_v32 }
 0x7db   : > { %2766 = vst.msk [vmem:[%s3695_s14 + $0x34] sm:$0xf] %vm975_vm2, %v2312_v24 }
 0x7dc   : > { %2765 = vst.msk [vmem:[%s3695_s14 + $0x30] sm:$0xf] %vm975_vm2, %v2311_v44 }
 0x7dd   : > { %v2963_v1 = vpop.permute.xlu1 %2962 }
 0x7de   : > { %v2965_v62 = vunpack.i.h.bf16 %v2963_v1  ;;  %v2964_v49 = vunpack.i.l.bf16 %v2963_v1 }
 0x7e5   : > { %v2321_v39 = vpop.permute.xlu1 %2320  ;;  %v2973_v0 = vpop.permute.xlu0 %2972 }
 0x7e6   : > { %2769 = vst.msk [vmem:[%s3380_s24 + $0x30] sm:$0xf] %vm975_vm2, %v2321_v39  ;;  %v2975_v46 = vunpack.i.h.bf16 %v2973_v0  ;;  %v2974_v10 = vunpack.i.l.bf16 %v2973_v0 }
 0x7e8   : > { %v2310_v38 = vsel %vm966_vm0, %v2965_v62, %v2975_v46  ;;  %v2309_v4 = vsel %vm966_vm0, %v2964_v49, %v2974_v10 }
 0x7e9   : > { %v2314_v23 = vpack.c.bf16 %v2310_v38, %v2310_v38  ;;  %v2313_v34 = vpack.c.bf16 %v2309_v4, %v2309_v4 }
 0x7eb   : > { %2768 = vst.msk [vmem:[%s3695_s14 + $0x3c] sm:$0xf] %vm975_vm2, %v2314_v23 }
 0x7ec   : > { %2767 = vst.msk [vmem:[%s3695_s14 + $0x38] sm:$0xf] %vm975_vm2, %v2313_v34 }
 0x7ed   : > { %v2327_v31 = vpop.permute.xlu1 %2326  ;;  %v2325_v45 = vpop.permute.xlu0 %2324 }
 0x7ee   : > { %2772 = vst.msk [vmem:[%s3380_s24 + $0x3c] sm:$0xf] %vm975_vm2, %v2327_v31 }
 0x7ef   : > { %2771 = vst.msk [vmem:[%s3380_s24 + $0x38] sm:$0xf] %vm975_vm2, %v2325_v45 }
 0x7f0 PF: > { %s21_s29 = sadd.s32 1, %s3145_s29   ;;  %s4576_s27 = smov %s3141_s28 }
 0x7f1   : > { %p18_p8 = scmp.ge.s32.totalorder %s21_s29, 4   ;;  %s4577_s28 = smov %s4579_s9 }
 0x7f3   :  { %20 = sbr.rel (!%p18_p8) target bundleno = 3 (0x3), region = 127 }
 0x7f8   :  { %2450 = vsyncpa [#allocation3], 1 }
 0x7f9   :  { %2452 = vsyncpa [#allocation3 + $0x1], 1 }
 0x7fa   :  { %2453 = vsyncpa [#allocation5], 1 }

</bundles_post_ra>
